<compile_context>
chip_gen: v5e
topology: v5e:2x2
jax: 0.10.0
libtpu: 0.0.40
codegen_flags: <defaults>
</compile_context>

<pallas_src>
import functools
import math

import jax
import jax.numpy as jnp
from jax.experimental import pallas as pl
from jax.experimental.pallas import tpu as pltpu

# Small, module-consistent shapes.
BS, N, DX, DE, DY, NHEAD = 2, 8, 32, 16, 16, 4
DF = DX // NHEAD


def _node_edge_kernel(x_ref, e_ref, mask_ref, ypack_ref,
                      qkv_w_ref, qkv_b_ref, me_w_ref, me_b_ref,
                      eo_w_ref, eo_b_ref, xo_w_ref, xo_b_ref,
                      newx_ref, newe_ref, *, g, n, nhead):
    """Processes `g` graphs of `n` nodes per grid step.

    Block layouts (all f32):
      x_ref     (g*n, dx)       node features, graphs stacked on rows
      e_ref     (g*n*n, de)     edge features, row = b*n*n + i*n + j
      mask_ref  (g*n, 1)        node mask in {0,1}
      ypack_ref (g, 1, 4*dx)    per-graph [ye_add | ye_mul | yx_add | yx_mul]
      newx_ref  (g*n, dx)
      newe_ref  (g*n, n*de)     lane-dense: lane j*de+c holds newE[b,i,j,c]
    """
    dx = xo_w_ref.shape[0]
    de = eo_w_ref.shape[1]
    inv_sqrt_df = 1.0 / math.sqrt(dx // nhead)

    Xf = x_ref[...]                        # (g*n, dx)
    Ef = e_ref[...]                        # (g*n*n, de)
    mask_col = mask_ref[...]               # (g*n, 1)

    # --- fused projections over ALL graphs in the block (two MXU pushes) ---
    QKV = jnp.dot(Xf, qkv_w_ref[...], preferred_element_type=jnp.float32) + qkv_b_ref[...]
    E12 = jnp.dot(Ef, me_w_ref[...], preferred_element_type=jnp.float32) + me_b_ref[...]
    # NOTE: per-tensor masks on Q/K/V and E1/E2 are intentionally elided; the
    # additive softmax key bias plus the final newX/newE output masks make the
    # results identical while saving full-tensor multiplies.

    # --- per-graph attention (static unroll over the g graphs in the block) ---
    newE_pre_parts = []
    emask_parts = []
    newX_pre_parts = []
    for b in range(g):
        r0, r1 = b * n, (b + 1) * n
        Q = QKV[r0:r1, :dx]
        K = QKV[r0:r1, dx:2 * dx]
        V = QKV[r0:r1, 2 * dx:]
        E1 = E12[b * n * n:(b + 1) * n * n, :dx].reshape(n, n, dx)   # e_mul
        E2 = E12[b * n * n:(b + 1) * n * n, dx:].reshape(n, n, dx)   # e_add
        m_b = mask_col[r0:r1, :]                                     # (n, 1)

        # Y[i, j, c] = Q[i, c]*K[j, c]/sqrt(df) * (E1+1) + E2 (heads are
        # contiguous DF-sized channel groups along c).
        Y = (Q[:, None, :] * K[None, :, :]) * inv_sqrt_df
        Y = Y * (E1 + 1.0) + E2                                      # (n, n, dx)

        yrow = ypack_ref[b]                                          # (1, 4*dx)
        ye_add = yrow[:, :dx]
        ye_mulp1 = yrow[:, dx:2 * dx] + 1.0
        yx_add = yrow[:, 2 * dx:3 * dx]
        yx_mulp1 = yrow[:, 3 * dx:] + 1.0

        newE_pre_parts.append(ye_add + ye_mulp1 * Y.reshape(n * n, dx))
        emask_parts.append((m_b[:, None, :] * m_b[None, :, :]).reshape(n * n, 1))

        # masked softmax over keys j: additive bias + EUP reciprocal.
        key_bias = (m_b[None, :, :] - 1.0) * 1e30                    # 0 keep / -1e30 drop
        Yb = Y + key_bias
        y_max = jnp.max(Yb, axis=1, keepdims=True)
        p_exp = jnp.exp(Yb - y_max)
        denom = jnp.sum(p_exp, axis=1, keepdims=True)
        attn = p_exp * pl.reciprocal(denom, approx=True)
        # NOTE: torch masked_softmax's all-masked fallback (return raw scores)
        # is dropped: when every node is masked the output masks zero the
        # results either way, so all finite outputs are identical.

        wV = jnp.sum(attn * V[None, :, :], axis=1)                   # (n, dx)
        newX_pre_parts.append(yx_add + yx_mulp1 * wV)

    newE_pre = jnp.concatenate(newE_pre_parts, axis=0)               # (g*n*n, dx)
    emask = jnp.concatenate(emask_parts, axis=0)                     # (g*n*n, 1)
    newX_pre = jnp.concatenate(newX_pre_parts, axis=0)               # (g*n, dx)

    # --- edge output: one MXU push, then lane-dense relayout via one-hot
    #     selection matmuls written straight into output lane slices ---
    newE_flat = (jnp.dot(newE_pre, eo_w_ref[...], preferred_element_type=jnp.float32)
                 + eo_b_ref[...]) * emask                            # (g*n*n, de)
    row_ids = jax.lax.broadcasted_iota(jnp.int32, (g * n, g * n * n), 0)
    col_ids = jax.lax.broadcasted_iota(jnp.int32, (g * n, g * n * n), 1)
    base = row_ids * n        # output row b*n+i gathers flat row b*n*n + i*n (+ j)
    # TODO(synk): at production n, tile this relayout over a key-block grid axis
    # instead of n unrolled selection matmuls.
    for j in range(n):
        sel = (col_ids == base + j).astype(jnp.float32)              # one-hot (g*n, g*n*n)
        newe_ref[:, j * de:(j + 1) * de] = jnp.dot(
            sel, newE_flat, preferred_element_type=jnp.float32)

    # --- node output: one MXU push + mask ---
    newX = (jnp.dot(newX_pre, xo_w_ref[...], preferred_element_type=jnp.float32)
            + xo_b_ref[...]) * mask_col
    newx_ref[...] = newX


def make_params(key):
    """Deterministic nn.Linear-style init; weights stored as (in, out)."""
    def linear(k, d_in, d_out):
        kw, kb = jax.random.split(k)
        bound = 1.0 / math.sqrt(d_in)
        w = jax.random.uniform(kw, (d_in, d_out), jnp.float32, -bound, bound)
        b = jax.random.uniform(kb, (d_out,), jnp.float32, -bound, bound)
        return w, b

    dims = {"q": (DX, DX), "k": (DX, DX), "v": (DX, DX),
            "e_add": (DE, DX), "e_mul": (DE, DX),
            "y_e_mul": (DY, DX), "y_e_add": (DY, DX),
            "y_x_mul": (DY, DX), "y_x_add": (DY, DX),
            "y_y": (DY, DY),
            "x_y": (4 * DX, DY), "e_y": (4 * DE, DY),   # Xtoy / Etoy linears
            "x_out": (DX, DX), "e_out": (DX, DE),
            "y_out1": (DY, DY), "y_out2": (DY, DY)}
    names = list(dims.keys())
    keys = jax.random.split(key, len(names))
    return {nm: linear(k, *dims[nm]) for nm, k in zip(names, keys)}


def pack_kernel_params(p):
    """One-time packing of kernel-side weights (hoisted out of the forward)."""
    return {
        "qkv_w": jnp.concatenate([p["q"][0], p["k"][0], p["v"][0]], axis=1),     # (dx, 3dx)
        "qkv_b": jnp.concatenate([p["q"][1], p["k"][1], p["v"][1]]).reshape(1, -1),
        "me_w": jnp.concatenate([p["e_mul"][0], p["e_add"][0]], axis=1),         # (de, 2dx)
        "me_b": jnp.concatenate([p["e_mul"][1], p["e_add"][1]]).reshape(1, -1),
        "eo_w": p["e_out"][0], "eo_b": p["e_out"][1].reshape(1, -1),
        "xo_w": p["x_out"][0], "xo_b": p["x_out"][1].reshape(1, -1),
        # fused y -> [ye_add | ye_mul | yx_add | yx_mul] projection (1 matmul/call)
        "ypack_w": jnp.concatenate([p["y_e_add"][0], p["y_e_mul"][0],
                                    p["y_x_add"][0], p["y_x_mul"][0]], axis=1),  # (dy, 4dx)
        "ypack_b": jnp.concatenate([p["y_e_add"][1], p["y_e_mul"][1],
                                    p["y_x_add"][1], p["y_x_mul"][1]]).reshape(1, -1),
    }


def node_edge_block(params, kparams, X, E, y, node_mask, *, graphs_per_step=None):
    p = params
    bs, n, dx = X.shape
    de = E.shape[-1]
    # Single grid step by default: best for single-TC v5e/v6e (no serial grid
    # overhead; fused projections see all bs*n rows in one MXU push).  On v7x
    # pass graphs_per_step = bs // 2 so each TensorCore gets one fat block.
    g = bs if graphs_per_step is None else graphs_per_step
    assert bs % g == 0 and (g * n) % 8 == 0
    steps = bs // g

    # Kernel-side inputs (layout plumbing only; weight packing is pre-done).
    ypack = (y @ kparams["ypack_w"] + kparams["ypack_b"]).reshape(bs, 1, 4 * dx)
    x_rows = X.reshape(bs * n, dx)
    e_rows = E.reshape(bs * n * n, de)
    mask_rows = node_mask.reshape(bs * n, 1).astype(jnp.float32)

    w_names = ("qkv_w", "qkv_b", "me_w", "me_b", "eo_w", "eo_b", "xo_w", "xo_b")
    weight_inputs = [kparams[k] for k in w_names]

    def w_spec(a):
        # Constant index map => weight block resident, no re-fetch on revisits.
        return pl.BlockSpec(a.shape, lambda s: (0, 0))

    grid_spec = pltpu.PrefetchScalarGridSpec(
        num_scalar_prefetch=0,
        grid=(steps,),
        in_specs=[
            pl.BlockSpec((g * n, dx), lambda s: (s, 0)),         # node rows
            pl.BlockSpec((g * n * n, de), lambda s: (s, 0)),     # edge rows
            pl.BlockSpec((g * n, 1), lambda s: (s, 0)),          # node mask
            pl.BlockSpec((g, 1, 4 * dx), lambda s: (s, 0, 0)),   # packed y projections
        ] + [w_spec(w) for w in weight_inputs],
        out_specs=(
            pl.BlockSpec((g * n, dx), lambda s: (s, 0)),         # newX
            pl.BlockSpec((g * n, n * de), lambda s: (s, 0)),     # newE (lane-dense)
        ),
    )

    newX_rows, newE_wide = pl.pallas_call(
        functools.partial(_node_edge_kernel, g=g, n=n, nhead=NHEAD),
        grid_spec=grid_spec,
        out_shape=(jax.ShapeDtypeStruct((bs * n, dx), jnp.float32),
                   jax.ShapeDtypeStruct((bs * n, n * de), jnp.float32)),
        compiler_params=pltpu.CompilerParams(dimension_semantics=("parallel",)),
    )(x_rows, e_rows, mask_rows, ypack, *weight_inputs)

    newX = newX_rows.reshape(bs, n, dx)
    newE = newE_wide.reshape(bs, n, n, de)

    # --- global-feature (y) branch (Xtoy / Etoy pooling + MLP), plain JAX ---
    y_y = y @ p["y_y"][0] + p["y_y"][1]
    xz = jnp.concatenate([X.mean(axis=1), X.min(axis=1), X.max(axis=1),
                          X.std(axis=1, ddof=1)], axis=-1)            # Xtoy pooling
    x_y = xz @ p["x_y"][0] + p["x_y"][1]
    ez = jnp.concatenate([E.mean(axis=(1, 2)), E.min(axis=(1, 2)),
                          E.max(axis=(1, 2)), E.std(axis=(1, 2), ddof=1)], axis=-1)
    e_y = ez @ p["e_y"][0] + p["e_y"][1]                               # Etoy pooling
    new_y = y_y + x_y + e_y
    new_y = jax.nn.relu(new_y @ p["y_out1"][0] + p["y_out1"][1])
    new_y = new_y @ p["y_out2"][0] + p["y_out2"][1]

    return newX, newE, new_y


def reference_xe(params, X, E, y, node_mask):
    """Pure-JAX replica of the torch forward for newX / newE (sanity check)."""
    p = params
    bs, n, dx = X.shape
    x_mask = node_mask[..., None].astype(jnp.float32)
    e_mask1 = x_mask[:, :, None, :]
    e_mask2 = x_mask[:, None, :, :]
    Q = (X @ p["q"][0] + p["q"][1]) * x_mask
    K = (X @ p["k"][0] + p["k"][1]) * x_mask
    V = (X @ p["v"][0] + p["v"][1]) * x_mask
    Y = Q.reshape(bs, n, 1, NHEAD, DF) * K.reshape(bs, 1, n, NHEAD, DF) / math.sqrt(DF)
    E1 = ((E @ p["e_mul"][0] + p["e_mul"][1]) * e_mask1 * e_mask2).reshape(bs, n, n, NHEAD, DF)
    E2 = ((E @ p["e_add"][0] + p["e_add"][1]) * e_mask1 * e_mask2).reshape(bs, n, n, NHEAD, DF)
    Y = Y * (E1 + 1) + E2
    newE = Y.reshape(bs, n, n, dx)
    ye1 = (y @ p["y_e_add"][0] + p["y_e_add"][1])[:, None, None, :]
    ye2 = (y @ p["y_e_mul"][0] + p["y_e_mul"][1])[:, None, None, :]
    newE = ye1 + (ye2 + 1) * newE
    newE = (newE @ p["e_out"][0] + p["e_out"][1]) * e_mask1 * e_mask2
    maskj = node_mask[:, None, :, None, None]
    Ym = jnp.where(maskj > 0, Y, -jnp.inf)
    sm = jax.nn.softmax(Ym, axis=2)
    attn = jnp.where(jnp.sum(node_mask) > 0, sm, Y)
    wV = (attn * V.reshape(bs, 1, n, NHEAD, DF)).sum(axis=2).reshape(bs, n, dx)
    yx1 = (y @ p["y_x_add"][0] + p["y_x_add"][1])[:, None, :]
    yx2 = (y @ p["y_x_mul"][0] + p["y_x_mul"][1])[:, None, :]
    newX = yx1 + (yx2 + 1) * wV
    newX = (newX @ p["x_out"][0] + p["x_out"][1]) * x_mask
    return newX, newE


if __name__ == "__main__":
    key = jax.random.PRNGKey(0)
    kp, kx, ke, ky = jax.random.split(key, 4)
    params = make_params(kp)
    kparams = pack_kernel_params(params)   # one-time weight packing (not per call)

    X = jax.random.normal(kx, (BS, N, DX), jnp.float32)
    E = jax.random.normal(ke, (BS, N, N, DE), jnp.float32)
    y = jax.random.normal(ky, (BS, DY), jnp.float32)
    node_mask = jnp.concatenate(
        [jnp.ones((BS, N - 2), jnp.float32), jnp.zeros((BS, 2), jnp.float32)], axis=1)

    fwd = jax.jit(node_edge_block)
    newX, newE, new_y = fwd(params, kparams, X, E, y, node_mask)
    jax.block_until_ready((newX, newE, new_y))

    refX, refE = reference_xe(params, X, E, y, node_mask)
    assert newX.shape == (BS, N, DX) and newE.shape == (BS, N, N, DE) and new_y.shape == (BS, DY)
    # newE has no reciprocal on its path -> tight tolerance; newX goes through
    # the approximate EUP reciprocal in the softmax -> slightly looser.
    assert jnp.allclose(newE, refE, atol=1e-4, rtol=1e-4)
    assert jnp.allclose(newX, refX, atol=5e-3, rtol=5e-3)
    assert bool(jnp.all(jnp.isfinite(new_y)))
    print("KERNEL_OK")
</pallas_src>

<mosaic_0001>
module attributes {stable_mosaic.version = 11 : i64} {
  func.func @_node_edge_kernel(%arg0: i32, %arg1: memref<16x32xf32, #tpu.memory_space<vmem>>, %arg2: memref<128x16xf32, #tpu.memory_space<vmem>>, %arg3: memref<16x1xf32, #tpu.memory_space<vmem>>, %arg4: memref<2x1x128xf32, #tpu.memory_space<vmem>>, %arg5: memref<32x96xf32, #tpu.memory_space<vmem>>, %arg6: memref<1x96xf32, #tpu.memory_space<vmem>>, %arg7: memref<16x64xf32, #tpu.memory_space<vmem>>, %arg8: memref<1x64xf32, #tpu.memory_space<vmem>>, %arg9: memref<32x16xf32, #tpu.memory_space<vmem>>, %arg10: memref<1x16xf32, #tpu.memory_space<vmem>>, %arg11: memref<32x32xf32, #tpu.memory_space<vmem>>, %arg12: memref<1x32xf32, #tpu.memory_space<vmem>>, %arg13: memref<16x32xf32, #tpu.memory_space<vmem>>, %arg14: memref<16x128xf32, #tpu.memory_space<vmem>>) attributes {dimension_semantics = [#tpu.dimension_semantics<parallel>], iteration_bounds = array<i64: 1>, scalar_prefetch = 0 : i64, scratch_operands = 0 : i64, tpu.core_type = #tpu.core_type<tc>, window_params = [{transform_indices = @transform_0, window_bounds = array<i64: 16, 32>}, {transform_indices = @transform_1, window_bounds = array<i64: 128, 16>}, {transform_indices = @transform_2, window_bounds = array<i64: 16, 1>}, {transform_indices = @transform_3, window_bounds = array<i64: 2, 1, 128>}, {pipeline_mode = #tpu.pipeline_mode<synchronous>, transform_indices = @transform_4, window_bounds = array<i64: 32, 96>}, {pipeline_mode = #tpu.pipeline_mode<synchronous>, transform_indices = @transform_5, window_bounds = array<i64: 1, 96>}, {pipeline_mode = #tpu.pipeline_mode<synchronous>, transform_indices = @transform_6, window_bounds = array<i64: 16, 64>}, {pipeline_mode = #tpu.pipeline_mode<synchronous>, transform_indices = @transform_7, window_bounds = array<i64: 1, 64>}, {pipeline_mode = #tpu.pipeline_mode<synchronous>, transform_indices = @transform_8, window_bounds = array<i64: 32, 16>}, {pipeline_mode = #tpu.pipeline_mode<synchronous>, transform_indices = @transform_9, window_bounds = array<i64: 1, 16>}, {pipeline_mode = #tpu.pipeline_mode<synchronous>, transform_indices = @transform_10, window_bounds = array<i64: 32, 32>}, {pipeline_mode = #tpu.pipeline_mode<synchronous>, transform_indices = @transform_11, window_bounds = array<i64: 1, 32>}, {transform_indices = @transform_12, window_bounds = array<i64: 16, 32>}, {transform_indices = @transform_13, window_bounds = array<i64: 16, 128>}]} {
    %c0 = arith.constant 0 : index
    %c0_0 = arith.constant 0 : index
    %0 = vector.load %arg1[%c0, %c0_0] : memref<16x32xf32, #tpu.memory_space<vmem>>, vector<16x32xf32>
    %c0_1 = arith.constant 0 : index
    %c0_2 = arith.constant 0 : index
    %1 = vector.load %arg2[%c0_1, %c0_2] : memref<128x16xf32, #tpu.memory_space<vmem>>, vector<128x16xf32>
    %c0_3 = arith.constant 0 : index
    %c0_4 = arith.constant 0 : index
    %2 = vector.load %arg3[%c0_3, %c0_4] : memref<16x1xf32, #tpu.memory_space<vmem>>, vector<16x1xf32>
    %c0_5 = arith.constant 0 : index
    %c0_6 = arith.constant 0 : index
    %3 = vector.load %arg5[%c0_5, %c0_6] : memref<32x96xf32, #tpu.memory_space<vmem>>, vector<32x96xf32>
    %cst = arith.constant dense<0.000000e+00> : vector<16x96xf32>
    %4 = tpu.matmul %0, %3, %cst {dimension_numbers = #tpu.dot_dimension_numbers<[1], [0], [0], [1], [0, 0, 1, 1], [], []>} : vector<16x32xf32>, vector<32x96xf32>, vector<16x96xf32> -> vector<16x96xf32>
    %c0_7 = arith.constant 0 : index
    %c0_8 = arith.constant 0 : index
    %5 = vector.load %arg6[%c0_7, %c0_8] : memref<1x96xf32, #tpu.memory_space<vmem>>, vector<1x96xf32>
    %6 = vector.broadcast %5 : vector<1x96xf32> to vector<16x96xf32>
    %7 = arith.addf %4, %6 : vector<16x96xf32>
    %c0_9 = arith.constant 0 : index
    %c0_10 = arith.constant 0 : index
    %8 = vector.load %arg7[%c0_9, %c0_10] : memref<16x64xf32, #tpu.memory_space<vmem>>, vector<16x64xf32>
    %cst_11 = arith.constant dense<0.000000e+00> : vector<128x64xf32>
    %9 = tpu.matmul %1, %8, %cst_11 {dimension_numbers = #tpu.dot_dimension_numbers<[1], [0], [0], [1], [0, 0, 1, 1], [], []>} : vector<128x16xf32>, vector<16x64xf32>, vector<128x64xf32> -> vector<128x64xf32>
    %c0_12 = arith.constant 0 : index
    %c0_13 = arith.constant 0 : index
    %10 = vector.load %arg8[%c0_12, %c0_13] : memref<1x64xf32, #tpu.memory_space<vmem>>, vector<1x64xf32>
    %11 = vector.broadcast %10 : vector<1x64xf32> to vector<128x64xf32>
    %12 = arith.addf %9, %11 : vector<128x64xf32>
    %13 = vector.extract_strided_slice %7 {offsets = [0, 0], sizes = [8, 32], strides = [1, 1]} : vector<16x96xf32> to vector<8x32xf32>
    %14 = vector.extract_strided_slice %7 {offsets = [0, 32], sizes = [8, 32], strides = [1, 1]} : vector<16x96xf32> to vector<8x32xf32>
    %15 = vector.extract_strided_slice %7 {offsets = [0, 64], sizes = [8, 32], strides = [1, 1]} : vector<16x96xf32> to vector<8x32xf32>
    %16 = vector.extract_strided_slice %12 {offsets = [0, 0], sizes = [64, 32], strides = [1, 1]} : vector<128x64xf32> to vector<64x32xf32>
    %17 = vector.shape_cast %16 : vector<64x32xf32> to vector<8x8x32xf32>
    %18 = vector.extract_strided_slice %12 {offsets = [0, 32], sizes = [64, 32], strides = [1, 1]} : vector<128x64xf32> to vector<64x32xf32>
    %19 = vector.shape_cast %18 : vector<64x32xf32> to vector<8x8x32xf32>
    %20 = vector.extract_strided_slice %2 {offsets = [0, 0], sizes = [8, 1], strides = [1, 1]} : vector<16x1xf32> to vector<8x1xf32>
    %21 = vector.shape_cast %13 : vector<8x32xf32> to vector<8x1x32xf32>
    %22 = vector.shape_cast %14 : vector<8x32xf32> to vector<1x8x32xf32>
    %23 = vector.broadcast %21 : vector<8x1x32xf32> to vector<8x8x32xf32>
    %24 = vector.broadcast %22 : vector<1x8x32xf32> to vector<8x8x32xf32>
    %25 = arith.mulf %23, %24 : vector<8x8x32xf32>
    %cst_14 = arith.constant 0.353553385 : f32
    %26 = vector.broadcast %cst_14 : f32 to vector<8x8x32xf32>
    %27 = arith.mulf %25, %26 : vector<8x8x32xf32>
    %cst_15 = arith.constant 1.000000e+00 : f32
    %28 = vector.broadcast %cst_15 : f32 to vector<8x8x32xf32>
    %29 = arith.addf %17, %28 : vector<8x8x32xf32>
    %30 = arith.mulf %27, %29 : vector<8x8x32xf32>
    %31 = arith.addf %30, %19 : vector<8x8x32xf32>
    %c0_16 = arith.constant 0 : index
    %c0_17 = arith.constant 0 : index
    %c0_18 = arith.constant 0 : index
    %32 = vector.load %arg4[%c0_16, %c0_17, %c0_18] : memref<2x1x128xf32, #tpu.memory_space<vmem>>, vector<1x1x128xf32>
    %33 = vector.shape_cast %32 : vector<1x1x128xf32> to vector<1x128xf32>
    %34 = vector.extract_strided_slice %33 {offsets = [0, 0], sizes = [1, 32], strides = [1, 1]} : vector<1x128xf32> to vector<1x32xf32>
    %35 = vector.extract_strided_slice %33 {offsets = [0, 32], sizes = [1, 32], strides = [1, 1]} : vector<1x128xf32> to vector<1x32xf32>
    %cst_19 = arith.constant 1.000000e+00 : f32
    %36 = vector.broadcast %cst_19 : f32 to vector<1x32xf32>
    %37 = arith.addf %35, %36 : vector<1x32xf32>
    %38 = vector.extract_strided_slice %33 {offsets = [0, 64], sizes = [1, 32], strides = [1, 1]} : vector<1x128xf32> to vector<1x32xf32>
    %39 = vector.extract_strided_slice %33 {offsets = [0, 96], sizes = [1, 32], strides = [1, 1]} : vector<1x128xf32> to vector<1x32xf32>
    %cst_20 = arith.constant 1.000000e+00 : f32
    %40 = vector.broadcast %cst_20 : f32 to vector<1x32xf32>
    %41 = arith.addf %39, %40 : vector<1x32xf32>
    %42 = vector.shape_cast %31 : vector<8x8x32xf32> to vector<64x32xf32>
    %43 = vector.broadcast %37 : vector<1x32xf32> to vector<64x32xf32>
    %44 = arith.mulf %43, %42 : vector<64x32xf32>
    %45 = vector.broadcast %34 : vector<1x32xf32> to vector<64x32xf32>
    %46 = arith.addf %45, %44 : vector<64x32xf32>
    %47 = vector.shape_cast %20 : vector<8x1xf32> to vector<8x1x1xf32>
    %48 = vector.shape_cast %20 : vector<8x1xf32> to vector<1x8x1xf32>
    %49 = vector.broadcast %47 : vector<8x1x1xf32> to vector<8x8x1xf32>
    %50 = vector.broadcast %48 : vector<1x8x1xf32> to vector<8x8x1xf32>
    %51 = arith.mulf %49, %50 : vector<8x8x1xf32>
    %52 = vector.shape_cast %51 : vector<8x8x1xf32> to vector<64x1xf32>
    %53 = vector.shape_cast %20 : vector<8x1xf32> to vector<1x8x1xf32>
    %cst_21 = arith.constant 1.000000e+00 : f32
    %54 = vector.broadcast %cst_21 : f32 to vector<1x8x1xf32>
    %55 = arith.subf %53, %54 : vector<1x8x1xf32>
    %cst_22 = arith.constant 1.000000e+30 : f32
    %56 = vector.broadcast %cst_22 : f32 to vector<1x8x1xf32>
    %57 = arith.mulf %55, %56 : vector<1x8x1xf32>
    %58 = vector.broadcast %57 : vector<1x8x1xf32> to vector<8x8x32xf32>
    %59 = arith.addf %31, %58 : vector<8x8x32xf32>
    %cst_23 = arith.constant dense<0xFF800000> : vector<8x32xf32>
    %60 = vector.multi_reduction <maximumf>, %59, %cst_23 [1] : vector<8x8x32xf32> to vector<8x32xf32>
    %61 = vector.shape_cast %60 : vector<8x32xf32> to vector<8x1x32xf32>
    %62 = vector.broadcast %61 : vector<8x1x32xf32> to vector<8x8x32xf32>
    %63 = arith.subf %59, %62 : vector<8x8x32xf32>
    %64 = math.exp %63 : vector<8x8x32xf32>
    %cst_24 = arith.constant dense<0.000000e+00> : vector<8x32xf32>
    %65 = vector.multi_reduction <add>, %64, %cst_24 [1] : vector<8x8x32xf32> to vector<8x32xf32>
    %66 = vector.shape_cast %65 : vector<8x32xf32> to vector<8x1x32xf32>
    %67 = tpu.reciprocal %66 {approx = true} : vector<8x1x32xf32> -> vector<8x1x32xf32>
    %68 = vector.broadcast %67 : vector<8x1x32xf32> to vector<8x8x32xf32>
    %69 = arith.mulf %64, %68 : vector<8x8x32xf32>
    %70 = vector.shape_cast %15 : vector<8x32xf32> to vector<1x8x32xf32>
    %71 = vector.broadcast %70 : vector<1x8x32xf32> to vector<8x8x32xf32>
    %72 = arith.mulf %69, %71 : vector<8x8x32xf32>
    %cst_25 = arith.constant dense<0.000000e+00> : vector<8x32xf32>
    %73 = vector.multi_reduction <add>, %72, %cst_25 [1] : vector<8x8x32xf32> to vector<8x32xf32>
    %74 = vector.broadcast %41 : vector<1x32xf32> to vector<8x32xf32>
    %75 = arith.mulf %74, %73 : vector<8x32xf32>
    %76 = vector.broadcast %38 : vector<1x32xf32> to vector<8x32xf32>
    %77 = arith.addf %76, %75 : vector<8x32xf32>
    %78 = vector.extract_strided_slice %7 {offsets = [8, 0], sizes = [8, 32], strides = [1, 1]} : vector<16x96xf32> to vector<8x32xf32>
    %79 = vector.extract_strided_slice %7 {offsets = [8, 32], sizes = [8, 32], strides = [1, 1]} : vector<16x96xf32> to vector<8x32xf32>
    %80 = vector.extract_strided_slice %7 {offsets = [8, 64], sizes = [8, 32], strides = [1, 1]} : vector<16x96xf32> to vector<8x32xf32>
    %81 = vector.extract_strided_slice %12 {offsets = [64, 0], sizes = [64, 32], strides = [1, 1]} : vector<128x64xf32> to vector<64x32xf32>
    %82 = vector.shape_cast %81 : vector<64x32xf32> to vector<8x8x32xf32>
    %83 = vector.extract_strided_slice %12 {offsets = [64, 32], sizes = [64, 32], strides = [1, 1]} : vector<128x64xf32> to vector<64x32xf32>
    %84 = vector.shape_cast %83 : vector<64x32xf32> to vector<8x8x32xf32>
    %85 = vector.extract_strided_slice %2 {offsets = [8, 0], sizes = [8, 1], strides = [1, 1]} : vector<16x1xf32> to vector<8x1xf32>
    %86 = vector.shape_cast %78 : vector<8x32xf32> to vector<8x1x32xf32>
    %87 = vector.shape_cast %79 : vector<8x32xf32> to vector<1x8x32xf32>
    %88 = vector.broadcast %86 : vector<8x1x32xf32> to vector<8x8x32xf32>
    %89 = vector.broadcast %87 : vector<1x8x32xf32> to vector<8x8x32xf32>
    %90 = arith.mulf %88, %89 : vector<8x8x32xf32>
    %cst_26 = arith.constant 0.353553385 : f32
    %91 = vector.broadcast %cst_26 : f32 to vector<8x8x32xf32>
    %92 = arith.mulf %90, %91 : vector<8x8x32xf32>
    %cst_27 = arith.constant 1.000000e+00 : f32
    %93 = vector.broadcast %cst_27 : f32 to vector<8x8x32xf32>
    %94 = arith.addf %82, %93 : vector<8x8x32xf32>
    %95 = arith.mulf %92, %94 : vector<8x8x32xf32>
    %96 = arith.addf %95, %84 : vector<8x8x32xf32>
    %c1 = arith.constant 1 : index
    %c0_28 = arith.constant 0 : index
    %c0_29 = arith.constant 0 : index
    %97 = vector.load %arg4[%c1, %c0_28, %c0_29] : memref<2x1x128xf32, #tpu.memory_space<vmem>>, vector<1x1x128xf32>
    %98 = vector.shape_cast %97 : vector<1x1x128xf32> to vector<1x128xf32>
    %99 = vector.extract_strided_slice %98 {offsets = [0, 0], sizes = [1, 32], strides = [1, 1]} : vector<1x128xf32> to vector<1x32xf32>
    %100 = vector.extract_strided_slice %98 {offsets = [0, 32], sizes = [1, 32], strides = [1, 1]} : vector<1x128xf32> to vector<1x32xf32>
    %cst_30 = arith.constant 1.000000e+00 : f32
    %101 = vector.broadcast %cst_30 : f32 to vector<1x32xf32>
    %102 = arith.addf %100, %101 : vector<1x32xf32>
    %103 = vector.extract_strided_slice %98 {offsets = [0, 64], sizes = [1, 32], strides = [1, 1]} : vector<1x128xf32> to vector<1x32xf32>
    %104 = vector.extract_strided_slice %98 {offsets = [0, 96], sizes = [1, 32], strides = [1, 1]} : vector<1x128xf32> to vector<1x32xf32>
    %cst_31 = arith.constant 1.000000e+00 : f32
    %105 = vector.broadcast %cst_31 : f32 to vector<1x32xf32>
    %106 = arith.addf %104, %105 : vector<1x32xf32>
    %107 = vector.shape_cast %96 : vector<8x8x32xf32> to vector<64x32xf32>
    %108 = vector.broadcast %102 : vector<1x32xf32> to vector<64x32xf32>
    %109 = arith.mulf %108, %107 : vector<64x32xf32>
    %110 = vector.broadcast %99 : vector<1x32xf32> to vector<64x32xf32>
    %111 = arith.addf %110, %109 : vector<64x32xf32>
    %112 = vector.shape_cast %85 : vector<8x1xf32> to vector<8x1x1xf32>
    %113 = vector.shape_cast %85 : vector<8x1xf32> to vector<1x8x1xf32>
    %114 = vector.broadcast %112 : vector<8x1x1xf32> to vector<8x8x1xf32>
    %115 = vector.broadcast %113 : vector<1x8x1xf32> to vector<8x8x1xf32>
    %116 = arith.mulf %114, %115 : vector<8x8x1xf32>
    %117 = vector.shape_cast %116 : vector<8x8x1xf32> to vector<64x1xf32>
    %118 = vector.shape_cast %85 : vector<8x1xf32> to vector<1x8x1xf32>
    %cst_32 = arith.constant 1.000000e+00 : f32
    %119 = vector.broadcast %cst_32 : f32 to vector<1x8x1xf32>
    %120 = arith.subf %118, %119 : vector<1x8x1xf32>
    %cst_33 = arith.constant 1.000000e+30 : f32
    %121 = vector.broadcast %cst_33 : f32 to vector<1x8x1xf32>
    %122 = arith.mulf %120, %121 : vector<1x8x1xf32>
    %123 = vector.broadcast %122 : vector<1x8x1xf32> to vector<8x8x32xf32>
    %124 = arith.addf %96, %123 : vector<8x8x32xf32>
    %cst_34 = arith.constant dense<0xFF800000> : vector<8x32xf32>
    %125 = vector.multi_reduction <maximumf>, %124, %cst_34 [1] : vector<8x8x32xf32> to vector<8x32xf32>
    %126 = vector.shape_cast %125 : vector<8x32xf32> to vector<8x1x32xf32>
    %127 = vector.broadcast %126 : vector<8x1x32xf32> to vector<8x8x32xf32>
    %128 = arith.subf %124, %127 : vector<8x8x32xf32>
    %129 = math.exp %128 : vector<8x8x32xf32>
    %cst_35 = arith.constant dense<0.000000e+00> : vector<8x32xf32>
    %130 = vector.multi_reduction <add>, %129, %cst_35 [1] : vector<8x8x32xf32> to vector<8x32xf32>
    %131 = vector.shape_cast %130 : vector<8x32xf32> to vector<8x1x32xf32>
    %132 = tpu.reciprocal %131 {approx = true} : vector<8x1x32xf32> -> vector<8x1x32xf32>
    %133 = vector.broadcast %132 : vector<8x1x32xf32> to vector<8x8x32xf32>
    %134 = arith.mulf %129, %133 : vector<8x8x32xf32>
    %135 = vector.shape_cast %80 : vector<8x32xf32> to vector<1x8x32xf32>
    %136 = vector.broadcast %135 : vector<1x8x32xf32> to vector<8x8x32xf32>
    %137 = arith.mulf %134, %136 : vector<8x8x32xf32>
    %cst_36 = arith.constant dense<0.000000e+00> : vector<8x32xf32>
    %138 = vector.multi_reduction <add>, %137, %cst_36 [1] : vector<8x8x32xf32> to vector<8x32xf32>
    %139 = vector.broadcast %106 : vector<1x32xf32> to vector<8x32xf32>
    %140 = arith.mulf %139, %138 : vector<8x32xf32>
    %141 = vector.broadcast %103 : vector<1x32xf32> to vector<8x32xf32>
    %142 = arith.addf %141, %140 : vector<8x32xf32>
    %143 = tpu.concatenate %46, %111 in 0 : vector<64x32xf32>, vector<64x32xf32> -> vector<128x32xf32>
    %144 = tpu.concatenate %52, %117 in 0 : vector<64x1xf32>, vector<64x1xf32> -> vector<128x1xf32>
    %145 = tpu.concatenate %77, %142 in 0 : vector<8x32xf32>, vector<8x32xf32> -> vector<16x32xf32>
    %c0_37 = arith.constant 0 : index
    %c0_38 = arith.constant 0 : index
    %146 = vector.load %arg9[%c0_37, %c0_38] : memref<32x16xf32, #tpu.memory_space<vmem>>, vector<32x16xf32>
    %cst_39 = arith.constant dense<0.000000e+00> : vector<128x16xf32>
    %147 = tpu.matmul %143, %146, %cst_39 {dimension_numbers = #tpu.dot_dimension_numbers<[1], [0], [0], [1], [0, 0, 1, 1], [], []>} : vector<128x32xf32>, vector<32x16xf32>, vector<128x16xf32> -> vector<128x16xf32>
    %c0_40 = arith.constant 0 : index
    %c0_41 = arith.constant 0 : index
    %148 = vector.load %arg10[%c0_40, %c0_41] : memref<1x16xf32, #tpu.memory_space<vmem>>, vector<1x16xf32>
    %149 = vector.broadcast %148 : vector<1x16xf32> to vector<128x16xf32>
    %150 = arith.addf %147, %149 : vector<128x16xf32>
    %151 = vector.broadcast %144 : vector<128x1xf32> to vector<128x16xf32>
    %152 = arith.mulf %150, %151 : vector<128x16xf32>
    %153 = tpu.iota {dimensions = array<i32: 0>} : vector<16x128xi32>
    %154 = tpu.iota {dimensions = array<i32: 1>} : vector<16x128xi32>
    %c8_i32 = arith.constant 8 : i32
    %155 = vector.broadcast %c8_i32 : i32 to vector<16x128xi32>
    %156 = arith.muli %153, %155 : vector<16x128xi32>
    %c0_i32 = arith.constant 0 : i32
    %157 = vector.broadcast %c0_i32 : i32 to vector<16x128xi32>
    %158 = arith.addi %156, %157 : vector<16x128xi32>
    %159 = arith.cmpi eq, %154, %158 : vector<16x128xi32>
    %160 = arith.extui %159 : vector<16x128xi1> to vector<16x128xi32>
    %161 = arith.sitofp %160 : vector<16x128xi32> to vector<16x128xf32>
    %cst_42 = arith.constant dense<0.000000e+00> : vector<16x16xf32>
    %162 = tpu.matmul %161, %152, %cst_42 {dimension_numbers = #tpu.dot_dimension_numbers<[1], [0], [0], [1], [0, 0, 1, 1], [], []>} : vector<16x128xf32>, vector<128x16xf32>, vector<16x16xf32> -> vector<16x16xf32>
    %c0_43 = arith.constant 0 : index
    %c0_44 = arith.constant 0 : index
    %163 = vector.load %arg14[%c0_43, %c0_44] : memref<16x128xf32, #tpu.memory_space<vmem>>, vector<16x16xf32>
    tpu.vector_store %arg14[%c0_43, %c0_44], %162 {strides = array<i32>} : memref<16x128xf32, #tpu.memory_space<vmem>>, vector<16x16xf32>,
    %c1_i32 = arith.constant 1 : i32
    %164 = vector.broadcast %c1_i32 : i32 to vector<16x128xi32>
    %165 = arith.addi %156, %164 : vector<16x128xi32>
    %166 = arith.cmpi eq, %154, %165 : vector<16x128xi32>
    %167 = arith.extui %166 : vector<16x128xi1> to vector<16x128xi32>
    %168 = arith.sitofp %167 : vector<16x128xi32> to vector<16x128xf32>
    %cst_45 = arith.constant dense<0.000000e+00> : vector<16x16xf32>
    %169 = tpu.matmul %168, %152, %cst_45 {dimension_numbers = #tpu.dot_dimension_numbers<[1], [0], [0], [1], [0, 0, 1, 1], [], []>} : vector<16x128xf32>, vector<128x16xf32>, vector<16x16xf32> -> vector<16x16xf32>
    %c0_46 = arith.constant 0 : index
    %c16 = arith.constant 16 : index
    %170 = vector.load %arg14[%c0_46, %c16] : memref<16x128xf32, #tpu.memory_space<vmem>>, vector<16x16xf32>
    tpu.vector_store %arg14[%c0_46, %c16], %169 {strides = array<i32>} : memref<16x128xf32, #tpu.memory_space<vmem>>, vector<16x16xf32>,
    %c2_i32 = arith.constant 2 : i32
    %171 = vector.broadcast %c2_i32 : i32 to vector<16x128xi32>
    %172 = arith.addi %156, %171 : vector<16x128xi32>
    %173 = arith.cmpi eq, %154, %172 : vector<16x128xi32>
    %174 = arith.extui %173 : vector<16x128xi1> to vector<16x128xi32>
    %175 = arith.sitofp %174 : vector<16x128xi32> to vector<16x128xf32>
    %cst_47 = arith.constant dense<0.000000e+00> : vector<16x16xf32>
    %176 = tpu.matmul %175, %152, %cst_47 {dimension_numbers = #tpu.dot_dimension_numbers<[1], [0], [0], [1], [0, 0, 1, 1], [], []>} : vector<16x128xf32>, vector<128x16xf32>, vector<16x16xf32> -> vector<16x16xf32>
    %c0_48 = arith.constant 0 : index
    %c32 = arith.constant 32 : index
    %177 = vector.load %arg14[%c0_48, %c32] : memref<16x128xf32, #tpu.memory_space<vmem>>, vector<16x16xf32>
    tpu.vector_store %arg14[%c0_48, %c32], %176 {strides = array<i32>} : memref<16x128xf32, #tpu.memory_space<vmem>>, vector<16x16xf32>,
    %c3_i32 = arith.constant 3 : i32
    %178 = vector.broadcast %c3_i32 : i32 to vector<16x128xi32>
    %179 = arith.addi %156, %178 : vector<16x128xi32>
    %180 = arith.cmpi eq, %154, %179 : vector<16x128xi32>
    %181 = arith.extui %180 : vector<16x128xi1> to vector<16x128xi32>
    %182 = arith.sitofp %181 : vector<16x128xi32> to vector<16x128xf32>
    %cst_49 = arith.constant dense<0.000000e+00> : vector<16x16xf32>
    %183 = tpu.matmul %182, %152, %cst_49 {dimension_numbers = #tpu.dot_dimension_numbers<[1], [0], [0], [1], [0, 0, 1, 1], [], []>} : vector<16x128xf32>, vector<128x16xf32>, vector<16x16xf32> -> vector<16x16xf32>
    %c0_50 = arith.constant 0 : index
    %c48 = arith.constant 48 : index
    %184 = vector.load %arg14[%c0_50, %c48] : memref<16x128xf32, #tpu.memory_space<vmem>>, vector<16x16xf32>
    tpu.vector_store %arg14[%c0_50, %c48], %183 {strides = array<i32>} : memref<16x128xf32, #tpu.memory_space<vmem>>, vector<16x16xf32>,
    %c4_i32 = arith.constant 4 : i32
    %185 = vector.broadcast %c4_i32 : i32 to vector<16x128xi32>
    %186 = arith.addi %156, %185 : vector<16x128xi32>
    %187 = arith.cmpi eq, %154, %186 : vector<16x128xi32>
    %188 = arith.extui %187 : vector<16x128xi1> to vector<16x128xi32>
    %189 = arith.sitofp %188 : vector<16x128xi32> to vector<16x128xf32>
    %cst_51 = arith.constant dense<0.000000e+00> : vector<16x16xf32>
    %190 = tpu.matmul %189, %152, %cst_51 {dimension_numbers = #tpu.dot_dimension_numbers<[1], [0], [0], [1], [0, 0, 1, 1], [], []>} : vector<16x128xf32>, vector<128x16xf32>, vector<16x16xf32> -> vector<16x16xf32>
    %c0_52 = arith.constant 0 : index
    %c64 = arith.constant 64 : index
    %191 = vector.load %arg14[%c0_52, %c64] : memref<16x128xf32, #tpu.memory_space<vmem>>, vector<16x16xf32>
    tpu.vector_store %arg14[%c0_52, %c64], %190 {strides = array<i32>} : memref<16x128xf32, #tpu.memory_space<vmem>>, vector<16x16xf32>,
    %c5_i32 = arith.constant 5 : i32
    %192 = vector.broadcast %c5_i32 : i32 to vector<16x128xi32>
    %193 = arith.addi %156, %192 : vector<16x128xi32>
    %194 = arith.cmpi eq, %154, %193 : vector<16x128xi32>
    %195 = arith.extui %194 : vector<16x128xi1> to vector<16x128xi32>
    %196 = arith.sitofp %195 : vector<16x128xi32> to vector<16x128xf32>
    %cst_53 = arith.constant dense<0.000000e+00> : vector<16x16xf32>
    %197 = tpu.matmul %196, %152, %cst_53 {dimension_numbers = #tpu.dot_dimension_numbers<[1], [0], [0], [1], [0, 0, 1, 1], [], []>} : vector<16x128xf32>, vector<128x16xf32>, vector<16x16xf32> -> vector<16x16xf32>
    %c0_54 = arith.constant 0 : index
    %c80 = arith.constant 80 : index
    %198 = vector.load %arg14[%c0_54, %c80] : memref<16x128xf32, #tpu.memory_space<vmem>>, vector<16x16xf32>
    tpu.vector_store %arg14[%c0_54, %c80], %197 {strides = array<i32>} : memref<16x128xf32, #tpu.memory_space<vmem>>, vector<16x16xf32>,
    %c6_i32 = arith.constant 6 : i32
    %199 = vector.broadcast %c6_i32 : i32 to vector<16x128xi32>
    %200 = arith.addi %156, %199 : vector<16x128xi32>
    %201 = arith.cmpi eq, %154, %200 : vector<16x128xi32>
    %202 = arith.extui %201 : vector<16x128xi1> to vector<16x128xi32>
    %203 = arith.sitofp %202 : vector<16x128xi32> to vector<16x128xf32>
    %cst_55 = arith.constant dense<0.000000e+00> : vector<16x16xf32>
    %204 = tpu.matmul %203, %152, %cst_55 {dimension_numbers = #tpu.dot_dimension_numbers<[1], [0], [0], [1], [0, 0, 1, 1], [], []>} : vector<16x128xf32>, vector<128x16xf32>, vector<16x16xf32> -> vector<16x16xf32>
    %c0_56 = arith.constant 0 : index
    %c96 = arith.constant 96 : index
    %205 = vector.load %arg14[%c0_56, %c96] : memref<16x128xf32, #tpu.memory_space<vmem>>, vector<16x16xf32>
    tpu.vector_store %arg14[%c0_56, %c96], %204 {strides = array<i32>} : memref<16x128xf32, #tpu.memory_space<vmem>>, vector<16x16xf32>,
    %c7_i32 = arith.constant 7 : i32
    %206 = vector.broadcast %c7_i32 : i32 to vector<16x128xi32>
    %207 = arith.addi %156, %206 : vector<16x128xi32>
    %208 = arith.cmpi eq, %154, %207 : vector<16x128xi32>
    %209 = arith.extui %208 : vector<16x128xi1> to vector<16x128xi32>
    %210 = arith.sitofp %209 : vector<16x128xi32> to vector<16x128xf32>
    %cst_57 = arith.constant dense<0.000000e+00> : vector<16x16xf32>
    %211 = tpu.matmul %210, %152, %cst_57 {dimension_numbers = #tpu.dot_dimension_numbers<[1], [0], [0], [1], [0, 0, 1, 1], [], []>} : vector<16x128xf32>, vector<128x16xf32>, vector<16x16xf32> -> vector<16x16xf32>
    %c0_58 = arith.constant 0 : index
    %c112 = arith.constant 112 : index
    %212 = vector.load %arg14[%c0_58, %c112] : memref<16x128xf32, #tpu.memory_space<vmem>>, vector<16x16xf32>
    tpu.vector_store %arg14[%c0_58, %c112], %211 {strides = array<i32>} : memref<16x128xf32, #tpu.memory_space<vmem>>, vector<16x16xf32>,
    %c0_59 = arith.constant 0 : index
    %c0_60 = arith.constant 0 : index
    %213 = vector.load %arg11[%c0_59, %c0_60] : memref<32x32xf32, #tpu.memory_space<vmem>>, vector<32x32xf32>
    %cst_61 = arith.constant dense<0.000000e+00> : vector<16x32xf32>
    %214 = tpu.matmul %145, %213, %cst_61 {dimension_numbers = #tpu.dot_dimension_numbers<[1], [0], [0], [1], [0, 0, 1, 1], [], []>} : vector<16x32xf32>, vector<32x32xf32>, vector<16x32xf32> -> vector<16x32xf32>
    %c0_62 = arith.constant 0 : index
    %c0_63 = arith.constant 0 : index
    %215 = vector.load %arg12[%c0_62, %c0_63] : memref<1x32xf32, #tpu.memory_space<vmem>>, vector<1x32xf32>
    %216 = vector.broadcast %215 : vector<1x32xf32> to vector<16x32xf32>
    %217 = arith.addf %214, %216 : vector<16x32xf32>
    %218 = vector.broadcast %2 : vector<16x1xf32> to vector<16x32xf32>
    %219 = arith.mulf %217, %218 : vector<16x32xf32>
    %c0_64 = arith.constant 0 : index
    %c0_65 = arith.constant 0 : index
    %220 = vector.load %arg13[%c0_64, %c0_65] : memref<16x32xf32, #tpu.memory_space<vmem>>, vector<16x32xf32>
    tpu.vector_store %arg13[%c0_64, %c0_65], %219 {strides = array<i32>} : memref<16x32xf32, #tpu.memory_space<vmem>>, vector<16x32xf32>,
    return
  }
  func.func @transform_0(%arg0: i32) -> (i32, i32) {
    %c0_i32 = arith.constant 0 : i32
    %c0_i32_0 = arith.constant 0 : i32
    return %arg0, %c0_i32 : i32, i32
  }
  func.func @transform_1(%arg0: i32) -> (i32, i32) {
    %c0_i32 = arith.constant 0 : i32
    %c0_i32_0 = arith.constant 0 : i32
    return %arg0, %c0_i32 : i32, i32
  }
  func.func @transform_2(%arg0: i32) -> (i32, i32) {
    %c0_i32 = arith.constant 0 : i32
    %c0_i32_0 = arith.constant 0 : i32
    return %arg0, %c0_i32 : i32, i32
  }
  func.func @transform_3(%arg0: i32) -> (i32, i32, i32) {
    %c0_i32 = arith.constant 0 : i32
    %c0_i32_0 = arith.constant 0 : i32
    %c0_i32_1 = arith.constant 0 : i32
    return %arg0, %c0_i32, %c0_i32_0 : i32, i32, i32
  }
  func.func @transform_4(%arg0: i32) -> (i32, i32) {
    %c0_i32 = arith.constant 0 : i32
    %c0_i32_0 = arith.constant 0 : i32
    %c0_i32_1 = arith.constant 0 : i32
    return %c0_i32, %c0_i32_0 : i32, i32
  }
  func.func @transform_5(%arg0: i32) -> (i32, i32) {
    %c0_i32 = arith.constant 0 : i32
    %c0_i32_0 = arith.constant 0 : i32
    %c0_i32_1 = arith.constant 0 : i32
    return %c0_i32, %c0_i32_0 : i32, i32
  }
  func.func @transform_6(%arg0: i32) -> (i32, i32) {
    %c0_i32 = arith.constant 0 : i32
    %c0_i32_0 = arith.constant 0 : i32
    %c0_i32_1 = arith.constant 0 : i32
    return %c0_i32, %c0_i32_0 : i32, i32
  }
  func.func @transform_7(%arg0: i32) -> (i32, i32) {
    %c0_i32 = arith.constant 0 : i32
    %c0_i32_0 = arith.constant 0 : i32
    %c0_i32_1 = arith.constant 0 : i32
    return %c0_i32, %c0_i32_0 : i32, i32
  }
  func.func @transform_8(%arg0: i32) -> (i32, i32) {
    %c0_i32 = arith.constant 0 : i32
    %c0_i32_0 = arith.constant 0 : i32
    %c0_i32_1 = arith.constant 0 : i32
    return %c0_i32, %c0_i32_0 : i32, i32
  }
  func.func @transform_9(%arg0: i32) -> (i32, i32) {
    %c0_i32 = arith.constant 0 : i32
    %c0_i32_0 = arith.constant 0 : i32
    %c0_i32_1 = arith.constant 0 : i32
    return %c0_i32, %c0_i32_0 : i32, i32
  }
  func.func @transform_10(%arg0: i32) -> (i32, i32) {
    %c0_i32 = arith.constant 0 : i32
    %c0_i32_0 = arith.constant 0 : i32
    %c0_i32_1 = arith.constant 0 : i32
    return %c0_i32, %c0_i32_0 : i32, i32
  }
  func.func @transform_11(%arg0: i32) -> (i32, i32) {
    %c0_i32 = arith.constant 0 : i32
    %c0_i32_0 = arith.constant 0 : i32
    %c0_i32_1 = arith.constant 0 : i32
    return %c0_i32, %c0_i32_0 : i32, i32
  }
  func.func @transform_12(%arg0: i32) -> (i32, i32) {
    %c0_i32 = arith.constant 0 : i32
    %c0_i32_0 = arith.constant 0 : i32
    return %arg0, %c0_i32 : i32, i32
  }
  func.func @transform_13(%arg0: i32) -> (i32, i32) {
    %c0_i32 = arith.constant 0 : i32
    %c0_i32_0 = arith.constant 0 : i32
    return %arg0, %c0_i32 : i32, i32
  }
}

</mosaic_0001>

<bundles_post_ra>
// kernel: node_edge_block.1
= control target key start
LH: loop header
LB: loop body
LE: loop exit
PB: predicated region body
PF: predicated region fallthrough
CT: control target
= control target key end

     0   :  { %19 = vsyncpa [#allocation3], 0  ;;  %s3415_s0 = inlined_call_operand.vmem [shape: f32[16,32], index: 0, kind: input, shape index: {}]   ;;  %s3416_s1 = inlined_call_operand.hbm [shape: f32[128,16], index: 1, kind: input, shape index: {}]   ;;  %s3417_s2 = inlined_call_operand.vmem [shape: f32[16,1], index: 2, kind: input, shape index: {}]   ;;  %s3418_s3 = inlined_call_operand.vmem [shape: f32[2,1,128], index: 3, kind: input, shape index: {}]   ;;  %s3419_s4 = inlined_call_operand.hbm [shape: f32[32,96], index: 4, kind: input, shape index: {}]   ;;  %s3420_s5 = inlined_call_operand.hbm [shape: f32[1,96], index: 5, kind: input, shape index: {}]   ;;  %s3421_s6 = inlined_call_operand.hbm [shape: f32[16,64], index: 6, kind: input, shape index: {}]   ;;  %s3422_s7 = inlined_call_operand.hbm [shape: f32[1,64], index: 7, kind: input, shape index: {}]   ;;  %s3423_s8 = inlined_call_operand.vmem [shape: f32[32,16], index: 8, kind: input, shape index: {}]   ;;  %s3424_s9 = inlined_call_operand.hbm [shape: f32[1,16], index: 9, kind: input, shape index: {}]   ;;  %s3425_s10 = inlined_call_operand.hbm [shape: f32[32,32], index: 10, kind: input, shape index: {}]   ;;  %s3426_s11 = inlined_call_operand.hbm [shape: f32[1,32], index: 11, kind: input, shape index: {}]   ;;  %s3427_s12 = inlined_call_operand.hbm [shape: f32[16,32], index: 12, kind: output, shape index: {0}]   ;;  %s3428_s13 = inlined_call_operand.vmem [shape: f32[16,128], index: 13, kind: output, shape index: {1}]  }
   0x1   :  { %20 = vsyncpa [#allocation6], 0 }
   0x2   :  { %21 = vsyncpa [#allocation9], 0 }
   0x3   :  { %22 = vsyncpa [#allocation12], 0 }
   0x4   :  { %23 = vsyncpa [#allocation15], 0 }
   0x5   :  { %24 = vsyncpa [#allocation4], 0  ;;  %s48_s27 = sshll.u32 %s3419_s4, 4  ;;  %s2326_s28 = smov [#allocation5]   ;;  %s49_s27 = int_to_ptr.hbm [resolvable:$true] %s48_s27 }
   0x6   :  { %s50_s29 = sshll.u32 %s2326_s28, 4  ;;  %s72_s15 = sshll.u32 %s3421_s6, 4  ;;  %s51_s29 = int_to_ptr.vmem [resolvable:$true] %s50_s29  ;;  %s73_s15 = int_to_ptr.hbm [resolvable:$true] %s72_s15 }
   0x7   :  { %s2327_s16 = smov 128   ;;  %s2328_s17 = smov 8  }
   0x8   :  { %56 = dma.hbm_to_vmem [thread:$0]  %s49_s27, 512, %s51_s29, [#allocation6], %s2327_s16, %s2327_s16, %s2328_s17  }
   0x9   :  { %s2329_s18 = smov [#allocation8]   ;;  %s99_s4 = sshll.u32 %s3424_s9, 4  ;;  %s100_s4 = int_to_ptr.hbm [resolvable:$true] %s99_s4 }
   0xa   :  { %s74_s19 = sshll.u32 %s2329_s18, 4  ;;  %s31_s23 = sshll.u32 %s3416_s1, 4  ;;  %s75_s19 = int_to_ptr.vmem [resolvable:$true] %s74_s19  ;;  %s32_s23 = int_to_ptr.hbm [resolvable:$true] %s31_s23 }
   0xb   :  { %80 = dma.hbm_to_vmem [thread:$0]  %s73_s15, 256, %s75_s19, [#allocation9], %s2327_s16, %s2327_s16, %s2328_s17  }
   0xc   :  { %s2330_s24 = smov [#allocation11]   ;;  %s2331_s26 = smov [#allocation2]  }
   0xd   :  { %s101_s25 = sshll.u32 %s2330_s24, 4  ;;  %s33_s27 = sshll.u32 %s2331_s26, 4  ;;  %s102_s25 = int_to_ptr.vmem [resolvable:$true] %s101_s25  ;;  %s34_s27 = int_to_ptr.vmem [resolvable:$true] %s33_s27 }
   0xe   :  { %104 = dma.hbm_to_vmem [thread:$0]  %s100_s4, 16, %s102_s25, [#allocation12]  }
   0xf   :  { %s62_s9 = sshll.u32 %s3420_s5, 4  ;;  %s86_s1 = sshll.u32 %s3422_s7, 4  ;;  %s63_s9 = int_to_ptr.hbm [resolvable:$true] %s62_s9  ;;  %s87_s1 = int_to_ptr.hbm [resolvable:$true] %s86_s1 }
  0x10   :  { %39 = dma.hbm_to_vmem [thread:$0]  %s32_s23, 2048, %s34_s27, [#allocation3], %s2327_s16, %s2327_s16, %s2328_s17  }
  0x11   :  { %s2332_s15 = smov [#allocation7]   ;;  %s2333_s19 = smov [#allocation10]  }
  0x12   :  { %s64_s18 = sshll.u32 %s2332_s15, 4  ;;  %s88_s20 = sshll.u32 %s2333_s19, 4  ;;  %s65_s18 = int_to_ptr.vmem [resolvable:$true] %s64_s18  ;;  %s89_s20 = int_to_ptr.vmem [resolvable:$true] %s88_s20 }
  0x13   :  { %67 = dma.hbm_to_vmem [thread:$0]  %s63_s9, 16, %s65_s18, [#allocation6]  }
  0x14   :  { %s109_s5 = sshll.u32 %s3425_s10, 4  ;;  %s123_s23 = sshll.u32 %s3426_s11, 4  ;;  %s110_s5 = int_to_ptr.hbm [resolvable:$true] %s109_s5  ;;  %s124_s23 = int_to_ptr.hbm [resolvable:$true] %s123_s23 }
  0x15   :  { %91 = dma.hbm_to_vmem [thread:$0]  %s87_s1, 16, %s89_s20, [#allocation9]  }
  0x16   :  { %s2334_s24 = smov [#allocation13]   ;;  %s2335_s25 = smov [#allocation14]  }
  0x17   :  { %s111_s7 = sshll.u32 %s2334_s24, 4  ;;  %s125_s26 = sshll.u32 %s2335_s25, 4  ;;  %s112_s7 = int_to_ptr.vmem [resolvable:$true] %s111_s7  ;;  %s126_s26 = int_to_ptr.vmem [resolvable:$true] %s125_s26 }
  0x18   :  { %117 = dma.hbm_to_vmem [thread:$0]  %s110_s5, 512, %s112_s7, [#allocation12], %s2327_s16, %s2327_s16, %s2328_s17  }
  0x19   :  { %128 = dma.hbm_to_vmem [thread:$0]  %s124_s23, 16, %s126_s26, [#allocation15]  }
  0x1a   :  { %2314 = dma.done.wait [#allocation3], 2048  }
  0x1b   :  { %2315 = vsyncadd [#allocation3], 4294965248 }
  0x1c   :  { %2316 = dma.done.wait [#allocation6], 528  }
  0x1d   :  { %2317 = vsyncadd [#allocation6], 4294966768 }
  0x1e   :  { %2318 = dma.done.wait [#allocation9], 272  }
  0x1f   :  { %2319 = vsyncadd [#allocation9], 4294967024 }
  0x20   :  { %2320 = dma.done.wait [#allocation12], 528  }
  0x21   :  { %2321 = vsyncadd [#allocation12], 4294966768 }
  0x22   :  { %2322 = dma.done.wait [#allocation15], 16  }
  0x23   :  { %2323 = vsyncadd [#allocation15], 4294967280  ;;  %v184_v0 = vld [vmem:[#allocation5 + $0x18] sm:$0xff]  ;;  %v220_v1 = vld [vmem:[#allocation8 + $0x8] sm:$0xff]  ;;  %vm225_vm0 = vcmask 130048   ;;  %vm189_vm1 = vcmask 261120  }
  0x24   :  { %v183_v2 = vld [vmem:[#allocation5 + $0x10] sm:$0xff]  ;;  %208 = vmatpush.msra.mxu0 %v184_v0  ;;  %288 = vmatpush.msra.mxu1 %v220_v1  ;;  %v219_v3 = vld [vmem:[#allocation8] sm:$0xff]  ;;  %v166_v10 = vld [vmem:[#allocation2 + $0x18] sm:$0xff]  ;;  %s2337_s29 = smov 32   ;;  %s2339_s26 = smov 64   ;;  %vm800_vm2 = vcmask 1041409  }
  0x25   :  { %v163_v4 = vld [vmem:[#allocation2] sm:$0xff]  ;;  %v182_v5 = vld [vmem:[#allocation5 + $0x8] sm:$0xff]  ;;  %v165_v9 = vld [vmem:[#allocation2 + $0x10] sm:$0xff]  ;;  %vm802_vm3 = vcmask 1042434   ;;  %vm804_vm4 = vcmask 1043459   ;;  %vm806_vm5 = vcmask 1044484  }
  0x26   :  { %209 = vmatpush.msra.mxu0 %v183_v2  ;;  %289 = vmatpush.msra.mxu1 %v219_v3  ;;  %v181_v6 = vld [vmem:[#allocation5] sm:$0xff]  ;;  %v164_v8 = vld [vmem:[#allocation2 + $0x8] sm:$0xff]  ;;  %v169_v13 = vld [vmem:[#allocation2 + $0x30] sm:$0xff]  ;;  %vm808_vm6 = vcmask 1045509   ;;  %vm810_vm7 = vcmask 1046534   ;;  %vm812_vm8 = vcmask 1047559  }
  0x27   :  { %1932 = vmatmul.msk.f32.vlgmr.msra.gmra.mxu1 %vm225_vm0, %v163_v4  ;;  %v161_v7 = vld [vmem:[%s3415_s0] sm:$0xff]  ;;  %v168_v12 = vld [vmem:[#allocation2 + $0x28] sm:$0xff]  ;;  %v170_v14 = vld [vmem:[#allocation2 + $0x38] sm:$0xff]  ;;  %s2341_s19 = smov 16   ;;  %s2343_s5 = smov 80  }
  0x28   :  { %210 = vmatpush.msra.mxu0 %v182_v5  ;;  %v167_v11 = vld [vmem:[#allocation2 + $0x20] sm:$0xff]  ;;  %v162_v16 = vld [vmem:[%s3415_s0 + $0x8] sm:$0xff]  ;;  %v173_v18 = vld [vmem:[#allocation2 + $0x50] sm:$0xff]  ;;  %s2336_s0 = smov 96   ;;  %s2344_s22 = smov 112  }
  0x29   :  { %v171_v15 = vld [vmem:[#allocation2 + $0x40] sm:$0xff]  ;;  %v172_v17 = vld [vmem:[#allocation2 + $0x48] sm:$0xff]  ;;  %v174_v19 = vld [vmem:[#allocation2 + $0x58] sm:$0xff]  ;;  %s1909_s7 = sshll.u32 %s3427_s12, 4  ;;  %s1910_s7 = int_to_ptr.hbm [resolvable:$true] %s1909_s7 }
  0x2a   :  { %211 = vmatpush.msra.mxu0 %v181_v6  ;;  %v2472_v21 = vld [vmem:[#allocation7] ss:$0 sm:$0xff]  ;;  %v2477_v24 = vld [vmem:[#allocation10] ss:$0 sm:$0xff]  ;;  %v176_v29 = vld [vmem:[#allocation2 + $0x68] sm:$0xff] }
  0x2b   :  { %1930 = vmatmul.msk.f32.vlgmr.msra.gmra.mxu0 %vm189_vm1, %v161_v7  ;;  %v175_v25 = vld [vmem:[#allocation2 + $0x60] sm:$0xff]  ;;  %v177_v32 = vld [vmem:[#allocation2 + $0x70] sm:$0xff]  ;;  %v178_v35 = vld [vmem:[#allocation2 + $0x78] sm:$0xff] }
  0x2f   :  { %1933 = vmatmul.msk.f32.gmra.mxu1 %vm225_vm0, %v164_v8 }
  0x33   :  { %1931 = vmatmul.msk.f32.gmra.mxu0 %vm189_vm1, %v162_v16 }
  0x37   :  { %1934 = vmatmul.msk.f32.gmra.mxu1 %vm225_vm0, %v165_v9 }
  0x3f   :  { %1935 = vmatmul.msk.f32.gmra.mxu1 %vm225_vm0, %v166_v10 }
  0x47   :  { %1936 = vmatmul.msk.f32.gmra.mxu1 %vm225_vm0, %v167_v11 }
  0x4f   :  { %1937 = vmatmul.msk.f32.gmra.mxu1 %vm225_vm0, %v168_v12 }
  0x57   :  { %1938 = vmatmul.msk.f32.gmra.mxu1 %vm225_vm0, %v169_v13 }
  0x5f   :  { %1939 = vmatmul.msk.f32.gmra.mxu1 %vm225_vm0, %v170_v14 }
  0x67   :  { %1940 = vmatmul.msk.f32.gmra.mxu1 %vm225_vm0, %v171_v15 }
  0x6f   :  { %1941 = vmatmul.msk.f32.gmra.mxu1 %vm225_vm0, %v172_v17 }
  0x77   :  { %1942 = vmatmul.msk.f32.gmra.mxu1 %vm225_vm0, %v173_v18 }
  0x7f   :  { %1943 = vmatmul.msk.f32.gmra.mxu1 %vm225_vm0, %v174_v19 }
  0x87   :  { %1944 = vmatmul.msk.f32.gmra.mxu1 %vm225_vm0, %v175_v25 }
  0x8f   :  { %1945 = vmatmul.msk.f32.gmra.mxu1 %vm225_vm0, %v176_v29 }
  0x97   :  { %1946 = vmatmul.msk.f32.gmra.mxu1 %vm225_vm0, %v177_v32 }
  0x9f   :  { %1947 = vmatmul.msk.f32.gmra.mxu1 %vm225_vm0, %v178_v35 }
  0xa4   :  { %v291_v20 = vpop.f32.mrf.mxu1 }
  0xa5   :  { %v292_v28 = vadd.f32 %v2477_v24, %v291_v20 }
  0xa7   :  { %v382_v63 = vadd.f32 1.0, %v292_v28 }
  0xa8   :  { %v213_v22 = vpop.f32.mrf.mxu0 }
  0xa9   :  { %v2475_v23 = vadd.f32 %v2472_v21, %v213_v22 }
  0xab   :  { %363 = vrot.lane.b32.xlu0 %v2475_v23, %s2336_s0  ;;  %v340_v44 = vrot.slane %v2475_v23, 1  ;;  %v341_v45 = vrot.slane %v2475_v23, 2  ;;  %v346_v46 = vrot.slane %v2475_v23, 7  ;;  %v347_v48 = vperm.slane %v2475_v23, 0 }
  0xac   :  { %v294_v26 = vpop.f32.mrf.mxu1  ;;  %v342_v56 = vrot.slane %v2475_v23, 3  ;;  %v343_v20 = vrot.slane %v2475_v23, 4  ;;  %v344_v29 = vrot.slane %v2475_v23, 5 }
  0xad   :  { %v295_v27 = vadd.f32 %v2477_v24, %v294_v26  ;;  %v348_v47 = vperm.slane %v340_v44, 0  ;;  %v349_v50 = vperm.slane %v341_v45, 0  ;;  %v354_v54 = vperm.slane %v346_v46, 0 }
  0xae   :  { %v350_v2 = vperm.slane %v342_v56, 0  ;;  %v351_v25 = vperm.slane %v343_v20, 0 }
  0xaf   :  { %408 = vrot.lane.b32.xlu1 %v295_v27, %s2336_s0  ;;  %v383_v55 = vadd.f32 1.0, %v295_v27 }
  0xb0   :  { %v216_v12 = vpop.f32.mrf.mxu0 }
  0xb1   :  { %v2534_v16 = vadd.f32 %v2472_v21, %v216_v12 }
  0xb3   :  { %406 = vrot.lane.b32.xlu0 %v292_v28, %s2336_s0 }
  0xb4   :  { %v297_v30 = vpop.f32.mrf.mxu1 }
  0xb5   :  { %v298_v31 = vadd.f32 %v2477_v24, %v297_v30 }
  0xb7   :  { %410 = vrot.lane.b32.xlu1 %v298_v31, %s2336_s0  ;;  %v384_v8 = vadd.f32 1.0, %v298_v31 }
  0xbc   :  { %v300_v33 = vpop.f32.mrf.mxu1 }
  0xbd   :  { %v301_v34 = vadd.f32 %v2477_v24, %v300_v33  ;;  %v352_v33 = vperm.slane %v344_v29, 0 }
  0xbf   :  { %412 = vrot.lane.b32.xlu2 %v301_v34, %s2336_s0  ;;  %v385_v19 = vadd.f32 1.0, %v301_v34 }
  0xc4   :  { %v303_v36 = vpop.f32.mrf.mxu1 }
  0xc5   :  { %v2494_v37 = vadd.f32 %v2477_v24, %v303_v36 }
  0xc7   :  { %414 = vrot.lane.b32.xlu2 %v2494_v37, %s2336_s0  ;;  %v386_v34 = vadd.f32 1.0, %v2494_v37 }
  0xcc   :  { %v306_v38 = vpop.f32.mrf.mxu1 }
  0xcd   :  { %v2499_v39 = vadd.f32 %v2477_v24, %v306_v38 }
  0xcf   :  { %416 = vrot.lane.b32.xlu0 %v2499_v39, %s2336_s0 }
  0xd4   :  { %v309_v40 = vpop.f32.mrf.mxu1 }
  0xd5   :  { %v2504_v41 = vadd.f32 %v2477_v24, %v309_v40  ;;  %v345_v40 = vrot.slane %v2475_v23, 6 }
  0xd7   :  { %418 = vrot.lane.b32.xlu2 %v2504_v41, %s2336_s0  ;;  %v353_v37 = vperm.slane %v345_v40, 0 }
  0xdc   :  { %v312_v42 = vpop.f32.mrf.mxu1 }
  0xdd   :  { %v313_v51 = vadd.f32 %v2477_v24, %v312_v42 }
  0xdf   :  { %v389_v0 = vadd.f32 1.0, %v313_v51 }
  0xe4   :  { %v315_v43 = vpop.f32.mrf.mxu1 }
  0xe5   :  { %v2550_v30 = vadd.f32 %v2477_v24, %v315_v43  ;;  %v387_v43 = vadd.f32 1.0, %v2499_v39  ;;  %v388_v39 = vadd.f32 1.0, %v2504_v41 }
  0xec   :  { %v318_v62 = vpop.f32.mrf.mxu1 }
  0xed   :  { %v2544_v21 = vadd.f32 %v2477_v24, %v318_v62 }
  0xf4   :  { %v321_v18 = vpop.f32.mrf.mxu1 }
  0xf5   :  { %v2560_v35 = vadd.f32 %v2477_v24, %v321_v18 }
  0xfc   :  { %v324_v31 = vpop.f32.mrf.mxu1 }
 0x104   :  { %v327_v46 = vpop.f32.mrf.mxu1 }
 0x10c   :  { %v330_v56 = vpop.f32.mrf.mxu1 }
 0x10d   :  { %v2589_v41 = vadd.f32 %v2477_v24, %v330_v56 }
 0x119   :  { %v413_v26 = vpop.permute.xlu2 %412 }
 0x11d   :  { %v2512_v49 = vpop.permute.xlu0 %363 }
 0x11e   :  { %v367_v52 = vmul.f32 %v2512_v49, %v348_v47  ;;  %v366_v53 = vmul.f32 %v2512_v49, %v347_v48  ;;  %v368_v59 = vmul.f32 %v2512_v49, %v349_v50  ;;  %v373_v60 = vmul.f32 %v2512_v49, %v354_v54 }
 0x11f   :  { %v369_v10 = vmul.f32 %v2512_v49, %v350_v2  ;;  %v370_v27 = vmul.f32 %v2512_v49, %v351_v25  ;;  %v371_v36 = vmul.f32 %v2512_v49, %v352_v33  ;;  %v372_v47 = vmul.f32 %v2512_v49, %v353_v37 }
 0x120   :  { %v375_v57 = vmul.f32 0.35355338, %v367_v52  ;;  %v374_v58 = vmul.f32 0.35355338, %v366_v53  ;;  %v376_v5 = vmul.f32 0.35355338, %v368_v59  ;;  %v325_v48 = vadd.f32 %v2477_v24, %v324_v31 }
 0x121   :  { %v409_v61 = vpop.permute.xlu1 %408  ;;  %v381_v6 = vmul.f32 0.35355338, %v373_v60  ;;  %v377_v17 = vmul.f32 0.35355338, %v369_v10  ;;  %v378_v32 = vmul.f32 0.35355338, %v370_v27  ;;  %v415_v42 = vpop.permute.xlu2 %414  ;;  %v2580_v49 = vadd.f32 %v2477_v24, %v327_v46 }
 0x122   :  { %v391_v1 = vmul.f32 %v383_v55, %v375_v57  ;;  %v390_v4 = vmul.f32 %v382_v63, %v374_v58  ;;  %v392_v13 = vmul.f32 %v384_v8, %v376_v5  ;;  %v379_v44 = vmul.f32 0.35355338, %v371_v36  ;;  %v333_v58 = vpop.f32.mrf.mxu1  ;;  %v438_v63 = vld [vmem:[%s3418_s3] sm:$0x1] }
 0x123   :  { %v2527_v11 = vmul.f32 %v389_v0, %v381_v6  ;;  %v393_v22 = vmul.f32 %v385_v19, %v377_v17  ;;  %v394_v38 = vmul.f32 %v386_v34, %v378_v32  ;;  %v380_v53 = vmul.f32 0.35355338, %v372_v47 }
 0x124   :  { %v2520_v3 = vadd.f32 %v409_v61, %v391_v1  ;;  %v395_v50 = vmul.f32 %v387_v43, %v379_v44  ;;  %v334_v59 = vadd.f32 %v2477_v24, %v333_v58  ;;  %v439_v1 = vadd.f32 1.0, %v438_v63 }
 0x125   :  { %v407_v7 = vpop.permute.xlu0 %406  ;;  %v2546_v28 = vadd.f32 %v413_v26, %v393_v22  ;;  %v2567_v45 = vadd.f32 %v415_v42, %v394_v38  ;;  %v396_v55 = vmul.f32 %v388_v39, %v380_v53  ;;  %v830_v10 = vrot.slane %v2534_v16, 7 }
 0x126   :  { %v2522_v9 = vadd.f32 %v407_v7, %v390_v4  ;;  %453 = vrot.lane.b32.xlu0 %v2520_v3, %s2337_s29  ;;  %v2600_v4 = vperm.slane %v439_v1, 0  ;;  %v826_v7 = vrot.slane %v2534_v16, 3  ;;  %v869_v19 = vadd.f32 1.0, %v325_v48 }
 0x127   :  { %v838_v18 = vperm.slane %v830_v10, 0  ;;  %v872_v25 = vadd.f32 1.0, %v334_v59  ;;  %v824_v33 = vrot.slane %v2534_v16, 1  ;;  %v866_v46 = vadd.f32 1.0, %v2550_v30 }
 0x128   :  { %451 = vrot.lane.b32.xlu1 %v2522_v9, %s2337_s29  ;;  %v834_v12 = vperm.slane %v826_v7, 0  ;;  %v825_v39 = vrot.slane %v2534_v16, 2  ;;  %v868_v63 = vadd.f32 1.0, %v2560_v35 }
 0x129   :  { %v411_v14 = vpop.permute.xlu1 %410 }
 0x12a   :  { %v2531_v15 = vadd.f32 %v411_v14, %v392_v13  ;;  %v336_v60 = vpop.f32.mrf.mxu1  ;;  %v831_v13 = vperm.slane %v2534_v16, 0 }
 0x12b   :  { %v337_v61 = vadd.f32 %v2477_v24, %v336_v60  ;;  %v829_v24 = vrot.slane %v2534_v16, 6 }
 0x12c   :  { %455 = vrot.lane.b32.xlu2 %v2531_v15, %s2337_s29 }
 0x12d   :  { %v837_v17 = vperm.slane %v829_v24, 0  ;;  %v873_v36 = vadd.f32 1.0, %v337_v61  ;;  %v827_v24 = vrot.slane %v2534_v16, 4 }
 0x12e   :  { %847 = vrot.lane.b32.xlu0 %v2534_v16, %s2336_s0 }
 0x130   :  { %420 = vrot.lane.b32.xlu1 %v313_v51, %s2336_s0 }
 0x131   :  { %v419_v54 = vpop.permute.xlu2 %418 }
 0x132   :  { %v2582_v57 = vadd.f32 %v419_v54, %v396_v55 }
 0x134   :  { %457 = vrot.lane.b32.xlu2 %v2546_v28, %s2337_s29 }
 0x136   :  { %892 = vrot.lane.b32.xlu0 %v2544_v21, %s2336_s0 }
 0x138   :  { %890 = vrot.lane.b32.xlu1 %v2550_v30, %s2336_s0  ;;  %v833_v30 = vperm.slane %v825_v39, 0 }
 0x13c   :  { %894 = vrot.lane.b32.xlu2 %v2560_v35, %s2336_s0 }
 0x140   :  { %459 = vrot.lane.b32.xlu1 %v2567_v45, %s2337_s29 }
 0x141   :  { %v417_v51 = vpop.permute.xlu0 %416 }
 0x142   :  { %v2573_v52 = vadd.f32 %v417_v51, %v395_v50 }
 0x144   :  { %896 = vrot.lane.b32.xlu2 %v325_v48, %s2336_s0  ;;  %461 = vrot.lane.b32.xlu0 %v2573_v52, %s2337_s29 }
 0x14c   :  { %898 = vrot.lane.b32.xlu2 %v2580_v49, %s2336_s0  ;;  %463 = vrot.lane.b32.xlu0 %v2582_v57, %s2337_s29 }
 0x154   :  { %900 = vrot.lane.b32.xlu2 %v2589_v41, %s2336_s0 }
 0x15c   :  { %902 = vrot.lane.b32.xlu2 %v334_v59, %s2336_s0  ;;  %v867_v59 = vadd.f32 1.0, %v2544_v21  ;;  %v828_v21 = vrot.slane %v2534_v16, 5 }
 0x164   :  { %904 = vrot.lane.b32.xlu2 %v337_v61, %s2336_s0 }
 0x186   :  { %v456_v62 = vpop.permute.xlu2 %455 }
 0x187   :  { %v477_v54 = vmul.f32 %v456_v62, %v2600_v4 }
 0x18e   :  { %v458_v0 = vpop.permute.xlu2 %457 }
 0x18f   :  { %v478_v1 = vmul.f32 %v458_v0, %v2600_v4  ;;  %v835_v0 = vperm.slane %v827_v24, 0 }
 0x196   :  { %v895_v8 = vpop.permute.xlu2 %894 }
 0x198   :  { %v454_v2 = vpop.permute.xlu0 %453 }
 0x199   :  { %v476_v31 = vmul.f32 %v454_v2, %v2600_v4 }
 0x19a   :  { %v452_v5 = vpop.permute.xlu1 %451 }
 0x19b   :  { %v475_v6 = vmul.f32 %v452_v5, %v2600_v4 }
 0x19d   :  { %494 = vrot.lane.b32.xlu1 %v475_v6, %s2336_s0 }
 0x19e   :  { %v897_v43 = vpop.permute.xlu2 %896 }
 0x1a0   :  { %v848_v14 = vpop.permute.xlu0 %847 }
 0x1a1   :  { %v853_v20 = vmul.f32 %v848_v14, %v834_v12  ;;  %v850_v22 = vmul.f32 %v848_v14, %v831_v13  ;;  %v856_v27 = vmul.f32 %v848_v14, %v837_v17  ;;  %v857_v29 = vmul.f32 %v848_v14, %v838_v18 }
 0x1a2   :  { %v421_v26 = vpop.permute.xlu1 %420  ;;  %v852_v60 = vmul.f32 %v848_v14, %v833_v30  ;;  %v854_v13 = vmul.f32 %v848_v14, %v835_v0  ;;  %v836_v17 = vperm.slane %v828_v21, 0 }
 0x1a3   :  { %v2610_v32 = vadd.f32 %v421_v26, %v2527_v11  ;;  %v861_v34 = vmul.f32 0.35355338, %v853_v20  ;;  %v864_v38 = vmul.f32 0.35355338, %v856_v27  ;;  %v858_v42 = vmul.f32 0.35355338, %v850_v22 }
 0x1a4   :  { %v865_v37 = vmul.f32 0.35355338, %v857_v29  ;;  %v832_v11 = vperm.slane %v824_v33, 0  ;;  %v860_v62 = vmul.f32 0.35355338, %v852_v60  ;;  %v870_v20 = vadd.f32 1.0, %v2580_v49 }
 0x1a5   :  { %465 = vrot.lane.b32.xlu0 %v2610_v32, %s2337_s29  ;;  %496 = vrot.lane.b32.xlu1 %v476_v31, %s2336_s0  ;;  %v877_v40 = vmul.f32 %v869_v19, %v861_v34  ;;  %v2616_v44 = vmul.f32 %v872_v25, %v864_v38  ;;  %v874_v51 = vmul.f32 %v866_v46, %v858_v42  ;;  %v862_v22 = vmul.f32 0.35355338, %v854_v13  ;;  %v1304_v49 = vld [vmem:[%s3423_s8 + $0x18] sm:$0xff]  ;;  %v1301_v38 = vld [vmem:[%s3423_s8] sm:$0xff] }
 0x1a6   :  { %v2621_v48 = vmul.f32 %v873_v36, %v865_v37  ;;  %v851_v50 = vmul.f32 %v848_v14, %v832_v11  ;;  %v876_v6 = vmul.f32 %v868_v63, %v860_v62  ;;  %v899_v12 = vpop.permute.xlu2 %898  ;;  %v855_v19 = vmul.f32 %v848_v14, %v836_v17  ;;  %1369 = vmatpush.msra.mxu2 %v1304_v49  ;;  %v1302_v36 = vld [vmem:[%s3423_s8 + $0x8] sm:$0xff]  ;;  %v1949_v37 = vld [vmem:[%s3418_s3 + $0x1] sm:$0x1] }
 0x1a7   :  { %v2619_v47 = vadd.f32 %v897_v43, %v877_v40  ;;  %v878_v29 = vmul.f32 %v870_v20, %v862_v22  ;;  %v2677_v40 = vld [vmem:[%s3418_s3] ss:$0 sm:$0xff]  ;;  %v924_v39 = vadd.f32 1.0, %v1949_v37 }
 0x1a8   :  { %v859_v56 = vmul.f32 0.35355338, %v851_v50  ;;  %v893_v58 = vpop.permute.xlu0 %892  ;;  %v2643_v35 = vadd.f32 %v895_v8, %v876_v6  ;;  %v871_v8 = vadd.f32 1.0, %v2589_v41  ;;  %v863_v27 = vmul.f32 0.35355338, %v855_v19  ;;  %v1303_v41 = vld [vmem:[%s3423_s8 + $0x10] sm:$0xff] }
 0x1a9   :  { %942 = vrot.lane.b32.xlu2 %v2619_v47, %s2337_s29  ;;  %v2654_v34 = vadd.f32 %v899_v12, %v878_v29  ;;  %1370 = vmatpush.msra.mxu2 %v1303_v41  ;;  %v2731_v29 = vld [vmem:[%s3417_s2 + $0x8] sm:$0xff] }
 0x1aa   :  { %v891_v53 = vpop.permute.xlu1 %890  ;;  %v875_v61 = vmul.f32 %v867_v59, %v859_v56  ;;  %v879_v33 = vmul.f32 %v871_v8, %v863_v27  ;;  %v1014_v41 = vrot.slane %v2731_v29, 3 }
 0x1ab   :  { %v2627_v55 = vadd.f32 %v891_v53, %v874_v51  ;;  %1371 = vmatpush.msra.mxu2 %v1302_v36 }
 0x1ac   :  { %v2635_v2 = vadd.f32 %v893_v58, %v875_v61  ;;  %v2338_v61 = vmov 0   ;;  %v1022_v36 = vperm.slane %v1014_v41, 0 }
 0x1ad   :  { %498 = vrot.lane.b32.xlu1 %v477_v54, %s2336_s0  ;;  %936 = vrot.lane.b32.xlu0 %v2627_v55, %s2337_s29  ;;  %v2688_v54 = vperm.slane %v924_v39, 0 }
 0x1ae   :  { %v901_v31 = vpop.permute.xlu2 %900  ;;  %1372 = vmatpush.msra.mxu2 %v1301_v38  ;;  %2021 = vset.pattern.permute.xlu2 %v2338_v61  ;;  %v1038_v38 = vmul.f32 %v1022_v36, %v2731_v29 }
 0x1af   :  { %v2656_v14 = vadd.f32 %v901_v31, %v879_v33  ;;  %2022 = vset.pattern.permute.xlu0 %v2338_v61  ;;  %2023 = vset.pattern.permute.xlu1 %v2338_v61  ;;  %v1017_v31 = vrot.slane %v2731_v29, 6  ;;  %v1016_v61 = vrot.slane %v2731_v29, 5 }
 0x1b1   :  { %v1025_v33 = vperm.slane %v1017_v31, 0 }
 0x1b2   :  { %v460_v7 = vpop.permute.xlu1 %459 }
 0x1b3   :  { %v479_v10 = vmul.f32 %v460_v7, %v2600_v4  ;;  %v1041_v49 = vmul.f32 %v1025_v33, %v2731_v29 }
 0x1b5   :  { %500 = vrot.lane.b32.xlu1 %v478_v1, %s2336_s0  ;;  %938 = vrot.lane.b32.xlu0 %v2635_v2, %s2337_s29 }
 0x1b6   :  { %v462_v5 = vpop.permute.xlu0 %461  ;;  %v903_v53 = vpop.permute.xlu2 %902 }
 0x1b7   :  { %v480_v25 = vmul.f32 %v462_v5, %v2600_v4  ;;  %v2691_v58 = vadd.f32 %v903_v53, %v2616_v44 }
 0x1bd   :  { %502 = vrot.lane.b32.xlu1 %v479_v10, %s2336_s0  ;;  %940 = vrot.lane.b32.xlu0 %v2643_v35, %s2337_s29 }
 0x1be   :  { %v464_v18 = vpop.permute.xlu0 %463  ;;  %v905_v63 = vpop.permute.xlu2 %904 }
 0x1bf   :  { %v481_v26 = vmul.f32 %v464_v18, %v2600_v4  ;;  %v2702_v6 = vadd.f32 %v905_v63, %v2621_v48  ;;  %v1024_v63 = vperm.slane %v1016_v61, 0 }
 0x1c5   :  { %504 = vrot.lane.b32.xlu1 %v480_v25, %s2336_s0  ;;  %506 = vrot.lane.b32.xlu0 %v481_v26, %s2336_s0  ;;  %v2722_v26 = vld [vmem:[%s3417_s2] sm:$0xff] }
 0x1c6   :  { %v1948_v8 = vadd.f32 -1.0, %v2722_v26  ;;  %v531_v37 = vrot.slane %v2722_v26, 5 }
 0x1c8   :  { %v559_v27 = vmul.f32 1e+30, %v1948_v8  ;;  %v527_v8 = vrot.slane %v2722_v26, 1 }
 0x1ca   :  { %v535_v33 = vperm.slane %v527_v8, 0 }
 0x1cd   :  { %944 = vrot.lane.b32.xlu1 %v2654_v34, %s2337_s29  ;;  %946 = vrot.lane.b32.xlu0 %v2656_v14, %s2337_s29 }
 0x203   :  { %v943_v7 = vpop.permute.xlu2 %942 }
 0x204   :  { %v963_v10 = vmul.f32 %v943_v7, %v2688_v54  ;;  %v2758_v7 = vld [vmem:[%s3418_s3 + $0x1] ss:$0 sm:$0xff] }
 0x20f   :  { %v495_v42 = vpop.permute.xlu1 %494 }
 0x210   :  { %v518_v43 = vadd.f32 %v2677_v40, %v495_v42  ;;  %v1019_v42 = vperm.slane %v2731_v29, 0 }
 0x212   :  { %1951 = vmatmul.msk.f32.vlgmr.msra.gmra.mxu2 %vm189_vm1, %v518_v43  ;;  %v1035_v43 = vmul.f32 %v1019_v42, %v2731_v29 }
 0x217   :  { %v497_v46 = vpop.permute.xlu1 %496  ;;  %v466_v11 = vpop.permute.xlu0 %465 }
 0x218   :  { %v519_v50 = vadd.f32 %v2677_v40, %v497_v46  ;;  %v482_v51 = vmul.f32 %v466_v11, %v2600_v4  ;;  %v539_v46 = vperm.slane %v531_v37, 0  ;;  %v528_v11 = vrot.slane %v2722_v26, 2 }
 0x21a   :  { %1952 = vmatmul.msk.f32.gmra.mxu2 %vm189_vm1, %v519_v50  ;;  %508 = vrot.lane.b32.xlu2 %v482_v51, %s2336_s0  ;;  %v536_v50 = vperm.slane %v528_v11, 0 }
 0x21c   :  { %v552_v53 = vmul.f32 %v536_v50, %v2722_v26 }
 0x21f   :  { %v499_v56 = vpop.permute.xlu1 %498  ;;  %v937_v30 = vpop.permute.xlu0 %936 }
 0x220   :  { %v520_v59 = vadd.f32 %v2677_v40, %v499_v56  ;;  %v960_v60 = vmul.f32 %v937_v30, %v2688_v54 }
 0x222   :  { %1953 = vmatmul.msk.f32.gmra.mxu2 %vm189_vm1, %v520_v59  ;;  %948 = vrot.lane.b32.xlu2 %v2691_v58, %s2337_s29  ;;  %v1950_v59 = vadd.f32 -1.0, %v2731_v29 }
 0x223   :  { %979 = vrot.lane.b32.xlu1 %v960_v60, %s2336_s0 }
 0x224   :  { %v1044_v60 = vmul.f32 1e+30, %v1950_v59 }
 0x227   :  { %v501_v1 = vpop.permute.xlu1 %500  ;;  %v939_v62 = vpop.permute.xlu0 %938 }
 0x228   :  { %v521_v44 = vadd.f32 %v2677_v40, %v501_v1  ;;  %v961_v5 = vmul.f32 %v939_v62, %v2688_v54  ;;  %v1040_v1 = vmul.f32 %v1024_v63, %v2731_v29 }
 0x22a   :  { %1954 = vmatmul.msk.f32.gmra.mxu2 %vm189_vm1, %v521_v44  ;;  %981 = vrot.lane.b32.xlu0 %v961_v5, %s2336_s0  ;;  %v533_v5 = vrot.slane %v2722_v26, 7 }
 0x22b   :  { %950 = vrot.lane.b32.xlu1 %v2702_v6, %s2337_s29 }
 0x22f   :  { %v503_v24 = vpop.permute.xlu1 %502  ;;  %v941_v21 = vpop.permute.xlu0 %940 }
 0x230   :  { %v522_v0 = vadd.f32 %v2677_v40, %v503_v24  ;;  %v962_v12 = vmul.f32 %v941_v21, %v2688_v54 }
 0x232   :  { %1955 = vmatmul.msk.f32.gmra.mxu2 %vm189_vm1, %v522_v0  ;;  %985 = vrot.lane.b32.xlu0 %v963_v10, %s2336_s0  ;;  %v541_v0 = vperm.slane %v533_v5, 0 }
 0x233   :  { %983 = vrot.lane.b32.xlu2 %v962_v12, %s2336_s0 }
 0x234   :  { %v557_v12 = vmul.f32 %v541_v0, %v2722_v26 }
 0x237   :  { %v505_v48 = vpop.permute.xlu1 %504  ;;  %v507_v13 = vpop.permute.xlu0 %506 }
 0x238   :  { %v523_v17 = vadd.f32 %v2677_v40, %v505_v48  ;;  %v524_v20 = vadd.f32 %v2677_v40, %v507_v13  ;;  %v530_v48 = vrot.slane %v2722_v26, 4 }
 0x23a   :  { %1956 = vmatmul.msk.f32.gmra.mxu2 %vm189_vm1, %v523_v17 }
 0x23f   :  { %v945_v18 = vpop.permute.xlu1 %944  ;;  %v947_v19 = vpop.permute.xlu0 %946 }
 0x240   :  { %v964_v22 = vmul.f32 %v945_v18, %v2688_v54  ;;  %v965_v25 = vmul.f32 %v947_v19, %v2688_v54 }
 0x242   :  { %987 = vrot.lane.b32.xlu1 %v964_v22, %s2336_s0  ;;  %1957 = vmatmul.msk.f32.gmra.mxu2 %vm189_vm1, %v524_v20  ;;  %v538_v22 = vperm.slane %v530_v48, 0 }
 0x243   :  { %989 = vrot.lane.b32.xlu2 %v965_v25, %s2336_s0 }
 0x244   :  { %v554_v25 = vmul.f32 %v538_v22, %v2722_v26 }
 0x24b   :  { %562 = vperm.xlu2 %2021, %v559_v27   ;;  %v1018_v27 = vrot.slane %v2731_v29, 7 }
 0x253   :  { %1210 = vrot.lane.b32.xlu2 %v2534_v16, %s2339_s26  ;;  %v555_v16 = vmul.f32 %v539_v46, %v2722_v26 }
 0x25b   :  { %1494 = vperm.xlu2 %2021, %v1041_v49   ;;  %v1026_v49 = vperm.slane %v1018_v27, 0 }
 0x263   :  { %1479 = vperm.xlu2 %2021, %v1038_v38   ;;  %v551_v38 = vmul.f32 %v535_v33, %v2722_v26 }
 0x26b   :  { %1464 = vperm.xlu2 %2021, %v1035_v43   ;;  %v1042_v43 = vmul.f32 %v1026_v49, %v2731_v29 }
 0x273   :  { %1449 = vperm.xlu2 %2021, %v555_v16  }
 0x274   :  { %v509_v51 = vpop.permute.xlu2 %508 }
 0x275   :  { %v525_v39 = vadd.f32 %v2677_v40, %v509_v51  ;;  %v1013_v40 = vrot.slane %v2731_v29, 2  ;;  %v1015_v51 = vrot.slane %v2731_v29, 4 }
 0x277   :  { %1958 = vmatmul.msk.f32.gmra.mxu2 %vm189_vm1, %v525_v39  ;;  %v1021_v62 = vperm.slane %v1013_v40, 0  ;;  %v1023_v63 = vperm.slane %v1015_v51, 0 }
 0x279   :  { %v1037_v44 = vmul.f32 %v1021_v62, %v2731_v29  ;;  %v1039_v0 = vmul.f32 %v1023_v63, %v2731_v29 }
 0x27b   :  { %1434 = vperm.xlu2 %2021, %v552_v53  }
 0x27c   :  { %v949_v56 = vpop.permute.xlu2 %948 }
 0x27d   :  { %v966_v30 = vmul.f32 %v949_v56, %v2688_v54 }
 0x27f   :  { %991 = vrot.lane.b32.xlu0 %v966_v30, %s2336_s0 }
 0x287   :  { %1047 = vperm.xlu0 %2022, %v1044_v60  }
 0x28d   :  { %v984_v10 = vpop.permute.xlu2 %983 }
 0x28e   :  { %v1005_v31 = vadd.f32 %v2758_v7, %v984_v10 }
 0x28f   :  { %1489 = vperm.xlu0 %2022, %v1040_v1  }
 0x295   :  { %v980_v24 = vpop.permute.xlu1 %979 }
 0x296   :  { %v1003_v21 = vadd.f32 %v2758_v7, %v980_v24 }
 0x297   :  { %1474 = vperm.xlu0 %2022, %v1037_v44  }
 0x298   :  { %1959 = vmatmul.msk.f32.gmra.mxu2 %vm189_vm1, %v1003_v21 }
 0x29c   :  { %v982_v13 = vpop.permute.xlu0 %981 }
 0x29d   :  { %v951_v17 = vpop.permute.xlu1 %950  ;;  %v1004_v18 = vadd.f32 %v2758_v7, %v982_v13  ;;  %v990_v20 = vpop.permute.xlu2 %989 }
 0x29e   :  { %v967_v19 = vmul.f32 %v951_v17, %v2688_v54  ;;  %v1012_v17 = vrot.slane %v2731_v29, 1 }
 0x29f   :  { %1459 = vperm.xlu0 %2022, %v557_v12  }
 0x2a0   :  { %993 = vrot.lane.b32.xlu1 %v967_v19, %s2336_s0  ;;  %1960 = vmatmul.msk.f32.gmra.mxu2 %vm189_vm1, %v1004_v18  ;;  %v1020_v22 = vperm.slane %v1012_v17, 0 }
 0x2a4   :  { %v986_v36 = vpop.permute.xlu0 %985 }
 0x2a5   :  { %v563_v41 = vpop.permute.xlu2 %562 }
 0x2a6   :  { %v2777_v42 = vadd.f32 %v563_v41, %v2522_v9  ;;  %v2781_v37 = vadd.f32 %v563_v41, %v2520_v3  ;;  %v2784_v46 = vadd.f32 %v563_v41, %v2531_v15  ;;  %v2788_v16 = vadd.f32 %v563_v41, %v2546_v28 }
 0x2a7   :  { %1444 = vperm.xlu0 %2022, %v554_v25   ;;  %v2794_v9 = vadd.f32 %v563_v41, %v2567_v45  ;;  %v2799_v15 = vadd.f32 %v563_v41, %v2573_v52  ;;  %v2807_v56 = vadd.f32 %v563_v41, %v2582_v57  ;;  %v2817_v24 = vadd.f32 %v563_v41, %v2610_v32 }
 0x2a8   :  { %725 = vrot.lane.b32.xlu1 %v2475_v23, %s2339_s26  ;;  %1961 = vmatmul.msk.f32.gmra.mxu2 %vm189_vm1, %v1005_v31  ;;  %v1006_v23 = vadd.f32 %v2758_v7, %v986_v36  ;;  %v573_v11 = vsel %vm189_vm1, %v2777_v42, -inf  ;;  %v580_v3 = vsel %vm189_vm1, %v2781_v37, -inf  ;;  %v587_v50 = vsel %vm189_vm1, %v2784_v46, -inf }
 0x2a9   :  { %v574_v28 = vrot.slane %v573_v11, 4  ;;  %v581_v39 = vrot.slane %v580_v3, 4  ;;  %v594_v53 = vsel %vm189_vm1, %v2788_v16, -inf  ;;  %v588_v45 = vrot.slane %v587_v50, 4 }
 0x2aa   :  { %v601_v30 = vsel %vm189_vm1, %v2794_v9, -inf  ;;  %v608_v52 = vsel %vm189_vm1, %v2799_v15, -inf  ;;  %v595_v61 = vrot.slane %v594_v53, 4  ;;  %v615_v5 = vsel %vm189_vm1, %v2807_v56, -inf }
 0x2ab   :  { %v575_v60 = vmax.f32 %v573_v11, %v574_v28  ;;  %v582_v1 = vmax.f32 %v580_v3, %v581_v39  ;;  %v602_v40 = vrot.slane %v601_v30, 4  ;;  %v589_v62 = vmax.f32 %v587_v50, %v588_v45 }
 0x2ac   :  { %v609_v44 = vrot.slane %v608_v52, 4  ;;  %v596_v10 = vmax.f32 %v594_v53, %v595_v61  ;;  %v616_v13 = vrot.slane %v615_v5, 4  ;;  %v1008_v25 = vadd.f32 %v2758_v7, %v990_v20 }
 0x2ad   :  { %v576_v21 = vrot.slane %v575_v60, 2  ;;  %v583_v12 = vrot.slane %v582_v1, 2  ;;  %v603_v48 = vmax.f32 %v601_v30, %v602_v40  ;;  %v590_v18 = vrot.slane %v589_v62, 2 }
 0x2ae   :  { %v610_v19 = vmax.f32 %v608_v52, %v609_v44  ;;  %v597_v32 = vrot.slane %v596_v10, 2  ;;  %v617_v33 = vmax.f32 %v615_v5, %v616_v13  ;;  %v622_v49 = vsel %vm189_vm1, %v2817_v24, -inf }
 0x2af   :  { %1429 = vperm.xlu0 %2022, %v551_v38   ;;  %v577_v8 = vmax.f32 %v575_v60, %v576_v21  ;;  %v584_v27 = vmax.f32 %v582_v1, %v583_v12  ;;  %v604_v31 = vrot.slane %v603_v48, 2  ;;  %v591_v41 = vmax.f32 %v589_v62, %v590_v18 }
 0x2b0   :  { %1499 = vperm.xlu1 %2023, %v1042_v43   ;;  %1962 = vmatmul.msk.f32.gmra.mxu2 %vm189_vm1, %v1006_v23  ;;  %v611_v36 = vrot.slane %v610_v19, 2  ;;  %v1036_v38 = vmul.f32 %v1020_v22, %v2731_v29  ;;  %v532_v43 = vrot.slane %v2722_v26, 6  ;;  %v598_v11 = vmax.f32 %v596_v10, %v597_v32 }
 0x2b1   :  { %v578_v23 = vrot.slane %v577_v8, 1  ;;  %v585_v3 = vrot.slane %v584_v27, 1  ;;  %v605_v20 = vmax.f32 %v603_v48, %v604_v31  ;;  %v618_v50 = vrot.slane %v617_v33, 2 }
 0x2b2   :  { %v623_v28 = vrot.slane %v622_v49, 4  ;;  %v592_v51 = vrot.slane %v591_v41, 1  ;;  %v612_v39 = vmax.f32 %v610_v19, %v611_v36  ;;  %v540_v53 = vperm.slane %v532_v43, 0 }
 0x2b3   :  { %v579_v45 = vmax.f32 %v577_v8, %v578_v23  ;;  %v599_v30 = vrot.slane %v598_v11, 1  ;;  %v586_v52 = vmax.f32 %v584_v27, %v585_v3  ;;  %v619_v60 = vmax.f32 %v617_v33, %v618_v50 }
 0x2b4   :  { %v988_v59 = vpop.permute.xlu1 %987  ;;  %v624_v29 = vmax.f32 %v622_v49, %v623_v28  ;;  %v593_v61 = vmax.f32 %v591_v41, %v592_v51  ;;  %v613_v63 = vrot.slane %v612_v39, 1  ;;  %v556_v1 = vmul.f32 %v540_v53, %v2722_v26 }
 0x2b5   :  { %v1007_v57 = vadd.f32 %v2758_v7, %v988_v59  ;;  %v606_v59 = vrot.slane %v605_v20, 1  ;;  %v529_v40 = vrot.slane %v2722_v26, 3  ;;  %v600_v62 = vmax.f32 %v598_v11, %v599_v30 }
 0x2b6   :  { %v629_v44 = vsub.f32 %v2777_v42, %v579_v45  ;;  %v630_v21 = vsub.f32 %v2781_v37, %v586_v52  ;;  %v614_v10 = vmax.f32 %v612_v39, %v613_v63  ;;  %v631_v12 = vsub.f32 %v2784_v46, %v593_v61 }
 0x2b7   :  { %v607_v5 = vmax.f32 %v605_v20, %v606_v59  ;;  %v537_v48 = vperm.slane %v529_v40, 0  ;;  %v632_v13 = vsub.f32 %v2788_v16, %v600_v62  ;;  %v534_v33 = vperm.slane %v2722_v26, 0 }
 0x2b8   :  { %1963 = vmatmul.msk.f32.gmra.mxu2 %vm189_vm1, %v1007_v57  ;;  %1484 = vperm.xlu1 %2023, %v1039_v0   ;;  %v625_v57 = vrot.slane %v624_v29, 2  ;;  %v620_v0 = vrot.slane %v619_v60, 1  ;;  %v637_v17 = vmul.f32 1.442695, %v629_v44  ;;  %v639_v22 = vmul.f32 1.442695, %v630_v21 }
 0x2b9   :  { %v633_v19 = vsub.f32 %v2794_v9, %v607_v5  ;;  %v634_v42 = vsub.f32 %v2799_v15, %v614_v10  ;;  %v641_v8 = vmul.f32 1.442695, %v631_v12  ;;  %v553_v32 = vmul.f32 %v537_v48, %v2722_v26 }
 0x2ba   :  { %v626_v18 = vmax.f32 %v624_v29, %v625_v57  ;;  %2030 = vpow2.f32 %v637_v17  ;;  %v643_v37 = vmul.f32 1.442695, %v632_v13  ;;  %v550_v41 = vmul.f32 %v534_v33, %v2722_v26 }
 0x2bb   :  { %2032 = vpow2.f32 %v639_v22  ;;  %v645_v46 = vmul.f32 1.442695, %v633_v19  ;;  %v647_v16 = vmul.f32 1.442695, %v634_v42 }
 0x2bc   :  { %v627_v27 = vrot.slane %v626_v18, 1  ;;  %2034 = vpow2.f32 %v641_v8 }
 0x2bd   :  { %2036 = vpow2.f32 %v643_v37 }
 0x2be   :  { %2038 = vpow2.f32 %v645_v46  ;;  %v628_v15 = vmax.f32 %v626_v18, %v627_v27 }
 0x2bf   :  { %2040 = vpow2.f32 %v647_v16 }
 0x2c0   :  { %1964 = vmatmul.msk.f32.gmra.mxu2 %vm189_vm1, %v1008_v25  ;;  %1469 = vperm.xlu1 %2023, %v1036_v38   ;;  %v621_v25 = vmax.f32 %v619_v60, %v620_v0  ;;  %v2839_v9 = vpop.eup %2030  ;;  %v636_v23 = vsub.f32 %v2817_v24, %v628_v15 }
 0x2c1   :  { %v2842_v36 = vpop.eup %2032 }
 0x2c2   :  { %v635_v31 = vsub.f32 %v2807_v56, %v621_v25  ;;  %v2844_v38 = vpop.eup %2034  ;;  %v653_v56 = vsel %vm189_vm1, %v2839_v9, 0.0  ;;  %v660_v11 = vsel %vm189_vm1, %v2842_v36, 0.0  ;;  %v651_v51 = vmul.f32 1.442695, %v636_v23 }
 0x2c3   :  { %v2848_v43 = vpop.eup %2036  ;;  %v667_v26 = vsel %vm189_vm1, %v2844_v38, 0.0  ;;  %v654_v50 = vrot.slane %v653_v56, 4  ;;  %v661_v28 = vrot.slane %v660_v11, 4 }
 0x2c4   :  { %v649_v49 = vmul.f32 1.442695, %v635_v31  ;;  %v2853_v3 = vpop.eup %2038  ;;  %v668_v39 = vrot.slane %v667_v26, 4  ;;  %v674_v53 = vsel %vm189_vm1, %v2848_v43, 0.0 }
 0x2c5   :  { %v2857_v20 = vpop.eup %2040  ;;  %v681_v24 = vsel %vm189_vm1, %v2853_v3, 0.0  ;;  %v655_v52 = vadd.f32 %v654_v50, %v653_v56  ;;  %v662_v59 = vadd.f32 %v661_v28, %v660_v11  ;;  %v675_v60 = vrot.slane %v674_v53, 4 }
 0x2c6   :  { %2042 = vpow2.f32 %v649_v49  ;;  %v688_v45 = vsel %vm189_vm1, %v2857_v20, 0.0  ;;  %v682_v29 = vrot.slane %v681_v24, 4  ;;  %v669_v61 = vadd.f32 %v668_v39, %v667_v26 }
 0x2c7   :  { %v689_v63 = vrot.slane %v688_v45, 4  ;;  %2044 = vpow2.f32 %v651_v51  ;;  %v656_v40 = vrot.slane %v655_v52, 2  ;;  %v663_v62 = vrot.slane %v662_v59, 2 }
 0x2c8   :  { %1454 = vperm.xlu1 %2023, %v556_v1   ;;  %v676_v44 = vadd.f32 %v675_v60, %v674_v53  ;;  %v683_v5 = vadd.f32 %v682_v29, %v681_v24  ;;  %v670_v57 = vrot.slane %v669_v61, 2 }
 0x2c9   :  { %v690_v21 = vadd.f32 %v689_v63, %v688_v45  ;;  %v657_v12 = vadd.f32 %v656_v40, %v655_v52  ;;  %v664_v17 = vadd.f32 %v663_v62, %v662_v59 }
 0x2ca   :  { %v677_v48 = vrot.slane %v676_v44, 2  ;;  %v684_v13 = vrot.slane %v683_v5, 2  ;;  %v671_v18 = vadd.f32 %v670_v57, %v669_v61 }
 0x2cb   :  { %v691_v19 = vrot.slane %v690_v21, 2  ;;  %v658_v42 = vrot.slane %v657_v12, 1  ;;  %v665_v8 = vrot.slane %v664_v17, 1 }
 0x2cc   :  { %v2865_v30 = vpop.eup %2042  ;;  %v685_v37 = vadd.f32 %v684_v13, %v683_v5  ;;  %v672_v46 = vrot.slane %v671_v18, 1 }
 0x2cd   :  { %v695_v1 = vsel %vm189_vm1, %v2865_v30, 0.0  ;;  %v2869_v0 = vpop.eup %2044  ;;  %v692_v31 = vadd.f32 %v691_v19, %v690_v21  ;;  %v659_v49 = vadd.f32 %v658_v42, %v657_v12 }
 0x2ce   :  { %v696_v10 = vrot.slane %v695_v1, 4  ;;  %v702_v25 = vsel %vm189_vm1, %v2869_v0, 0.0  ;;  %v686_v23 = vrot.slane %v685_v37, 1  ;;  %v673_v11 = vadd.f32 %v672_v46, %v671_v18 }
 0x2cf   :  { %v703_v33 = vrot.slane %v702_v25, 4  ;;  %v693_v26 = vrot.slane %v692_v31, 1  ;;  %2046 = vrcp.f32 %v659_v49 }
 0x2d0   :  { %1439 = vperm.xlu1 %2023, %v553_v32   ;;  %v697_v22 = vadd.f32 %v696_v10, %v695_v1  ;;  %v678_v32 = vadd.f32 %v677_v48, %v676_v44  ;;  %v2881_v39 = vadd.f32 %v686_v23, %v685_v37 }
 0x2d1   :  { %v2877_v28 = vadd.f32 %v703_v33, %v702_v25  ;;  %v2883_v24 = vadd.f32 %v693_v26, %v692_v31 }
 0x2d2   :  { %v698_v16 = vrot.slane %v697_v22, 2  ;;  %v679_v56 = vrot.slane %v678_v32, 1 }
 0x2d3   :  { %v705_v52 = vrot.slane %v2877_v28, 2 }
 0x2d4   :  { %v2875_v50 = vadd.f32 %v698_v16, %v697_v22  ;;  %v2879_v51 = vadd.f32 %v679_v56, %v678_v32 }
 0x2d6   :  { %v700_v45 = vrot.slane %v2875_v50, 1 }
 0x2d8   :  { %1424 = vperm.xlu1 %2023, %v550_v41   ;;  %v666_v41 = vadd.f32 %v665_v8, %v664_v17 }
 0x2da   :  { %2048 = vrcp.f32 %v666_v41 }
 0x2db   :  { %2050 = vrcp.f32 %v673_v11 }
 0x2dc   :  { %2052 = vrcp.f32 %v2879_v51 }
 0x2dd   :  { %2054 = vrcp.f32 %v2881_v39  ;;  %v701_v39 = vadd.f32 %v700_v45, %v2875_v50 }
 0x2de   :  { %2056 = vrcp.f32 %v2883_v24 }
 0x2f1   :  { %v992_v27 = vpop.permute.xlu0 %991 }
 0x2f2   :  { %v1009_v15 = vadd.f32 %v2758_v7, %v992_v27 }
 0x2f4   :  { %1965 = vmatmul.msk.f32.gmra.mxu2 %vm189_vm1, %v1009_v15 }
 0x2f9   :  { %v1048_v53 = vpop.permute.xlu0 %1047 }
 0x2fa   :  { %v2888_v59 = vadd.f32 %v1048_v53, %v2627_v55  ;;  %v2891_v60 = vadd.f32 %v1048_v53, %v2635_v2  ;;  %v2894_v29 = vadd.f32 %v1048_v53, %v2643_v35  ;;  %v2897_v61 = vadd.f32 %v1048_v53, %v2619_v47 }
 0x2fb   :  { %v2900_v63 = vadd.f32 %v1048_v53, %v2654_v34  ;;  %v2903_v1 = vadd.f32 %v1048_v53, %v2656_v14  ;;  %v2906_v40 = vadd.f32 %v1048_v53, %v2691_v58  ;;  %v2909_v55 = vadd.f32 %v1048_v53, %v2702_v6  ;;  %v2919_v14 = vpop.eup %2046 }
 0x2fc   :  { %v1058_v2 = vsel %vm189_vm1, %v2888_v59, -inf  ;;  %v1065_v35 = vsel %vm189_vm1, %v2891_v60, -inf  ;;  %v1072_v47 = vsel %vm189_vm1, %v2894_v29, -inf  ;;  %v1079_v34 = vsel %vm189_vm1, %v2897_v61, -inf  ;;  %v2921_v6 = vpop.eup %2048 }
 0x2fd   :  { %v1059_v62 = vrot.slane %v1058_v2, 4  ;;  %v1066_v58 = vrot.slane %v1065_v35, 4  ;;  %v1073_v44 = vrot.slane %v1072_v47, 4  ;;  %v1080_v5 = vrot.slane %v1079_v34, 4  ;;  %v2931_v48 = vpop.eup %2050 }
 0x2fe   :  { %v1086_v57 = vsel %vm189_vm1, %v2900_v63, -inf  ;;  %v1093_v21 = vsel %vm189_vm1, %v2903_v1, -inf  ;;  %v1100_v10 = vsel %vm189_vm1, %v2906_v40, -inf  ;;  %v1107_v12 = vsel %vm189_vm1, %v2909_v55, -inf }
 0x2ff   :  { %v1060_v13 = vmax.f32 %v1058_v2, %v1059_v62  ;;  %v1067_v17 = vmax.f32 %v1065_v35, %v1066_v58  ;;  %v1074_v18 = vmax.f32 %v1072_v47, %v1073_v44  ;;  %v1081_v19 = vmax.f32 %v1079_v34, %v1080_v5 }
 0x300   :  { %v1087_v22 = vrot.slane %v1086_v57, 4  ;;  %v1094_v25 = vrot.slane %v1093_v21, 4  ;;  %v1101_v42 = vrot.slane %v1100_v10, 4  ;;  %v1108_v8 = vrot.slane %v1107_v12, 4 }
 0x301   :  { %v1061_v32 = vrot.slane %v1060_v13, 2  ;;  %v1068_v37 = vrot.slane %v1067_v17, 2  ;;  %v1075_v27 = vrot.slane %v1074_v18, 2  ;;  %v1082_v46 = vrot.slane %v1081_v19, 2 }
 0x302   :  { %v1088_v31 = vmax.f32 %v1086_v57, %v1087_v22  ;;  %v1095_v16 = vmax.f32 %v1093_v21, %v1094_v25  ;;  %v1102_v33 = vmax.f32 %v1100_v10, %v1101_v42  ;;  %v1109_v15 = vmax.f32 %v1107_v12, %v1108_v8 }
 0x303   :  { %v1062_v49 = vmax.f32 %v1060_v13, %v1061_v32  ;;  %v1069_v41 = vmax.f32 %v1067_v17, %v1068_v37  ;;  %v1076_v56 = vmax.f32 %v1074_v18, %v1075_v27  ;;  %v1083_v23 = vmax.f32 %v1081_v19, %v1082_v46  ;;  %v2938_v37 = vpop.f32.mrf.mxu2 }
 0x304   :  { %v1089_v11 = vrot.slane %v1088_v31, 2  ;;  %v1096_v26 = vrot.slane %v1095_v16, 2  ;;  %v1103_v53 = vrot.slane %v1102_v33, 2  ;;  %v1110_v2 = vrot.slane %v1109_v15, 2 }
 0x305   :  { %v1063_v35 = vrot.slane %v1062_v49, 1  ;;  %v1070_v47 = vrot.slane %v1069_v41, 1  ;;  %v1077_v34 = vrot.slane %v1076_v56, 1  ;;  %v1084_v62 = vrot.slane %v1083_v23, 1 }
 0x306   :  { %v1090_v58 = vmax.f32 %v1088_v31, %v1089_v11  ;;  %v1097_v44 = vmax.f32 %v1095_v16, %v1096_v26  ;;  %v1104_v5 = vmax.f32 %v1102_v33, %v1103_v53  ;;  %v706_v57 = vadd.f32 %v705_v52, %v2877_v28 }
 0x307   :  { %v1064_v21 = vmax.f32 %v1062_v49, %v1063_v35  ;;  %v1071_v10 = vmax.f32 %v1069_v41, %v1070_v47  ;;  %v1078_v12 = vmax.f32 %v1076_v56, %v1077_v34  ;;  %v1085_v13 = vmax.f32 %v1083_v23, %v1084_v62  ;;  %v2053_v41 = vpop.eup %2052 }
 0x308   :  { %v1091_v17 = vrot.slane %v1090_v58, 1  ;;  %v1098_v18 = vrot.slane %v1097_v44, 1  ;;  %v1105_v19 = vrot.slane %v1104_v5, 1  ;;  %v1111_v22 = vmax.f32 %v1109_v15, %v1110_v2 }
 0x309   :  { %v1114_v25 = vsub.f32 %v2888_v59, %v1064_v21  ;;  %v1115_v42 = vsub.f32 %v2891_v60, %v1071_v10  ;;  %v1116_v8 = vsub.f32 %v2894_v29, %v1078_v12  ;;  %v1117_v32 = vsub.f32 %v2897_v61, %v1085_v13 }
 0x30a   :  { %v1092_v27 = vmax.f32 %v1090_v58, %v1091_v17  ;;  %v1099_v28 = vmax.f32 %v1097_v44, %v1098_v18  ;;  %v1106_v52 = vmax.f32 %v1104_v5, %v1105_v19  ;;  %v707_v33 = vrot.slane %v706_v57, 1 }
 0x30b   :  { %v1122_v46 = vmul.f32 1.442695, %v1114_v25  ;;  %v1124_v31 = vmul.f32 1.442695, %v1115_v42  ;;  %v1126_v16 = vmul.f32 1.442695, %v1116_v8  ;;  %v2954_v2 = vpop.f32.mrf.mxu2  ;;  %v717_v21 = vmul.f32 %v2919_v14, %v2839_v9 }
 0x30c   :  { %v1118_v59 = vsub.f32 %v2900_v63, %v1092_v27  ;;  %v1119_v60 = vsub.f32 %v2903_v1, %v1099_v28  ;;  %v1112_v29 = vrot.slane %v1111_v22, 1  ;;  %v1128_v61 = vmul.f32 1.442695, %v1117_v32  ;;  %v2055_v1 = vpop.eup %2054 }
 0x30d   :  { %2058 = vpow2.f32 %v1122_v46  ;;  %v1120_v15 = vsub.f32 %v2906_v40, %v1106_v52  ;;  %v708_v63 = vadd.f32 %v707_v33, %v706_v57  ;;  %v2057_v24 = vpop.eup %2056  ;;  %v718_v18 = vmul.f32 %v2921_v6, %v2842_v36 }
 0x30e   :  { %2060 = vpow2.f32 %v1124_v31  ;;  %v1130_v49 = vmul.f32 1.442695, %v1118_v59  ;;  %v1132_v51 = vmul.f32 1.442695, %v1119_v60  ;;  %v1113_v56 = vmax.f32 %v1111_v22, %v1112_v29 }
 0x30f   :  { %2062 = vpow2.f32 %v1126_v16  ;;  %v1134_v23 = vmul.f32 1.442695, %v1120_v15  ;;  %v719_v52 = vmul.f32 %v2931_v48, %v2844_v38  ;;  %v720_v36 = vmul.f32 %v2053_v41, %v2848_v43 }
 0x310   :  { %2064 = vpow2.f32 %v1128_v61  ;;  %v1121_v35 = vsub.f32 %v2909_v55, %v1113_v56  ;;  %v721_v60 = vmul.f32 %v2055_v1, %v2853_v3  ;;  %v722_v29 = vmul.f32 %v2057_v24, %v2857_v20 }
 0x311   :  { %2066 = vpow2.f32 %v1130_v49 }
 0x312   :  { %2068 = vpow2.f32 %v1132_v51  ;;  %v994_v11 = vpop.permute.xlu1 %993  ;;  %v1136_v22 = vmul.f32 1.442695, %v1121_v35 }
 0x313   :  { %v2949_v26 = vpop.eup %2058  ;;  %v1010_v40 = vadd.f32 %v2758_v7, %v994_v11  ;;  %2070 = vrcp.f32 %v701_v39  ;;  %v2991_v38 = vpop.f32.mrf.mxu2 }
 0x314   :  { %v2952_v53 = vpop.eup %2060  ;;  %v1138_v50 = vsel %vm189_vm1, %v2949_v26, 0.0  ;;  %2072 = vrcp.f32 %v708_v63 }
 0x315   :  { %v2958_v45 = vpop.eup %2062  ;;  %v1139_v47 = vrot.slane %v1138_v50, 4  ;;  %v1145_v34 = vsel %vm189_vm1, %v2952_v53, 0.0  ;;  %1966 = vmatmul.msk.f32.gmra.mxu2 %vm189_vm1, %v1010_v40  ;;  %2074 = vpow2.f32 %v1134_v23 }
 0x316   :  { %v2964_v7 = vpop.eup %2064  ;;  %v1146_v62 = vrot.slane %v1145_v34, 4  ;;  %v1152_v58 = vsel %vm189_vm1, %v2958_v45, 0.0  ;;  %2076 = vpow2.f32 %v1136_v22 }
 0x317   :  { %v2968_v44 = vpop.eup %2066  ;;  %v1140_v5 = vadd.f32 %v1139_v47, %v1138_v50  ;;  %v1153_v57 = vrot.slane %v1152_v58, 4  ;;  %v1159_v55 = vsel %vm189_vm1, %v2964_v7, 0.0 }
 0x318   :  { %v2974_v10 = vpop.eup %2068  ;;  %v1147_v12 = vadd.f32 %v1146_v62, %v1145_v34  ;;  %v1160_v13 = vrot.slane %v1159_v55, 4  ;;  %v1166_v17 = vsel %vm189_vm1, %v2968_v44, 0.0 }
 0x319   :  { %v2071_v19 = vpop.eup %2070  ;;  %v1141_v25 = vrot.slane %v1140_v5, 2  ;;  %v1154_v42 = vadd.f32 %v1153_v57, %v1152_v58  ;;  %v1173_v8 = vsel %vm189_vm1, %v2974_v10, 0.0  ;;  %v1167_v14 = vrot.slane %v1166_v17, 4 }
 0x31a   :  { %v2073_v32 = vpop.eup %2072  ;;  %v1148_v27 = vrot.slane %v1147_v12, 2  ;;  %v1161_v9 = vadd.f32 %v1160_v13, %v1159_v55  ;;  %v726_v28 = vpop.permute.xlu1 %725  ;;  %v1174_v16 = vrot.slane %v1173_v8, 4  ;;  %v723_v15 = vmul.f32 %v2071_v19, %v2865_v30 }
 0x31b   :  { %v1142_v46 = vadd.f32 %v1141_v25, %v1140_v5  ;;  %v1155_v31 = vrot.slane %v1154_v42, 2  ;;  %v2985_v6 = vpop.eup %2074  ;;  %v728_v33 = vmul.f32 %v726_v28, %v717_v21  ;;  %v729_v61 = vmul.f32 %v726_v28, %v718_v18 }
 0x31c   :  { %v1149_v59 = vadd.f32 %v1148_v27, %v1147_v12  ;;  %v724_v49 = vmul.f32 %v2073_v32, %v2869_v0  ;;  %v1162_v51 = vrot.slane %v1161_v9, 2  ;;  %v2993_v39 = vadd.f32 %v1167_v14, %v1166_v17  ;;  %v3009_v62 = vpop.eup %2076 }
 0x31d   :  { %v1143_v48 = vrot.slane %v1142_v46, 1  ;;  %v730_v43 = vmul.f32 %v726_v28, %v719_v52  ;;  %v2995_v41 = vadd.f32 %v1155_v31, %v1154_v42  ;;  %v2997_v63 = vadd.f32 %v1174_v16, %v1173_v8 }
 0x31e   :  { %v3001_v3 = vsel %vm189_vm1, %v2985_v6, 0.0  ;;  %v736_v20 = vsel %vm189_vm1, %v728_v33, 0.0  ;;  %v1150_v30 = vrot.slane %v1149_v59, 1  ;;  %v743_v1 = vsel %vm189_vm1, %v729_v61, 0.0 }
 0x31f   :  { %v737_v0 = vrot.slane %v736_v20, 4  ;;  %v750_v56 = vsel %vm189_vm1, %v730_v43, 0.0  ;;  %v731_v24 = vmul.f32 %v726_v28, %v720_v36  ;;  %v732_v23 = vmul.f32 %v726_v28, %v721_v60 }
 0x320   :  { %v744_v11 = vrot.slane %v743_v1, 4  ;;  %v751_v40 = vrot.slane %v750_v56, 4  ;;  %v1144_v50 = vadd.f32 %v1143_v48, %v1142_v46  ;;  %v3006_v35 = vadd.f32 %v1162_v51, %v1161_v9  ;;  %v3017_v46 = vpop.f32.mrf.mxu2 }
 0x321   :  { %v1169_v47 = vrot.slane %v2993_v39, 2  ;;  %v738_v34 = vadd.f32 %v737_v0, %v736_v20  ;;  %v733_v5 = vmul.f32 %v726_v28, %v722_v29  ;;  %v734_v57 = vmul.f32 %v726_v28, %v723_v15 }
 0x322   :  { %v745_v58 = vadd.f32 %v744_v11, %v743_v1  ;;  %v735_v55 = vmul.f32 %v726_v28, %v724_v49  ;;  %v1151_v21 = vadd.f32 %v1150_v30, %v1149_v59  ;;  %v1157_v12 = vrot.slane %v2995_v41, 1 }
 0x323   :  { %v739_v13 = vrot.slane %v738_v34, 2  ;;  %v752_v17 = vadd.f32 %v751_v40, %v750_v56  ;;  %v757_v19 = vsel %vm189_vm1, %v731_v24, 0.0  ;;  %v764_v22 = vsel %vm189_vm1, %v732_v23, 0.0 }
 0x324   :  { %v746_v18 = vrot.slane %v745_v58, 2  ;;  %v771_v25 = vsel %vm189_vm1, %v733_v5, 0.0  ;;  %v758_v32 = vrot.slane %v757_v19, 4  ;;  %v765_v27 = vrot.slane %v764_v22, 4 }
 0x325   :  { %v740_v42 = vadd.f32 %v739_v13, %v738_v34  ;;  %v753_v8 = vrot.slane %v752_v17, 2  ;;  %v772_v14 = vrot.slane %v771_v25, 4  ;;  %v778_v28 = vsel %vm189_vm1, %v734_v57, 0.0 }
 0x326   :  { %v747_v9 = vadd.f32 %v746_v18, %v745_v58  ;;  %v785_v52 = vsel %vm189_vm1, %v735_v55, 0.0  ;;  %v759_v36 = vadd.f32 %v758_v32, %v757_v19  ;;  %v766_v59 = vadd.f32 %v765_v27, %v764_v22 }
 0x327   :  { %v741_v31 = vrot.slane %v740_v42, 1  ;;  %v754_v16 = vadd.f32 %v753_v8, %v752_v17  ;;  %v773_v33 = vadd.f32 %v772_v14, %v771_v25  ;;  %v779_v29 = vrot.slane %v778_v28, 4 }
 0x328   :  { %v748_v60 = vrot.slane %v747_v9, 1  ;;  %v786_v61 = vrot.slane %v785_v52, 4  ;;  %v760_v48 = vrot.slane %v759_v36, 2  ;;  %v767_v51 = vrot.slane %v766_v59, 2 }
 0x329   :  { %v742_v15 = vadd.f32 %v741_v31, %v740_v42  ;;  %v755_v49 = vrot.slane %v754_v16, 1  ;;  %v774_v20 = vrot.slane %v773_v33, 2  ;;  %v780_v30 = vadd.f32 %v779_v29, %v778_v28 }
 0x32a   :  { %v749_v43 = vadd.f32 %v748_v60, %v747_v9  ;;  %v787_v0 = vadd.f32 %v786_v61, %v785_v52  ;;  %2078 = vrcp.f32 %v1144_v50  ;;  %v761_v56 = vadd.f32 %v760_v48, %v759_v36  ;;  %v3028_v9 = vpop.f32.mrf.mxu2 }
 0x32b   :  { %v756_v1 = vadd.f32 %v755_v49, %v754_v16  ;;  %v768_v24 = vadd.f32 %v767_v51, %v766_v59  ;;  %v775_v23 = vadd.f32 %v774_v20, %v773_v33  ;;  %v781_v11 = vrot.slane %v780_v30, 2 }
 0x32c   :  { %v788_v40 = vrot.slane %v787_v0, 2  ;;  %v801_v34 = vsel %vm800_vm2, %v749_v43, %v742_v15  ;;  %v1181_v58 = vrot.slane %v3001_v3, 4  ;;  %2080 = vrcp.f32 %v1151_v21  ;;  %v3043_v43 = vpop.permute.xlu2 %1210 }
 0x32d   :  { %v762_v5 = vrot.slane %v761_v56, 1  ;;  %v769_v57 = vrot.slane %v768_v24, 1  ;;  %v776_v55 = vrot.slane %v775_v23, 1  ;;  %v782_v13 = vadd.f32 %v781_v11, %v780_v30 }
 0x32e   :  { %v789_v17 = vadd.f32 %v788_v40, %v787_v0  ;;  %v803_v18 = vsel %vm802_vm3, %v756_v1, %v801_v34  ;;  %v1158_v50 = vadd.f32 %v1157_v12, %v2995_v41  ;;  %v1164_v22 = vrot.slane %v3006_v35, 1 }
 0x32f   :  { %v763_v19 = vadd.f32 %v762_v5, %v761_v56  ;;  %v1170_v25 = vadd.f32 %v1169_v47, %v2993_v39  ;;  %v770_v42 = vadd.f32 %v769_v57, %v768_v24  ;;  %v783_v8 = vrot.slane %v782_v13, 1 }
 0x330   :  { %v790_v32 = vrot.slane %v789_v17, 1  ;;  %v1176_v21 = vrot.slane %v2997_v63, 2  ;;  %v2079_v27 = vpop.eup %2078  ;;  %v777_v14 = vadd.f32 %v776_v55, %v775_v23  ;;  %v1182_v41 = vadd.f32 %v1181_v58, %v3001_v3 }
 0x331   :  { %v805_v28 = vsel %vm804_vm4, %v763_v19, %v803_v18  ;;  %v1171_v52 = vrot.slane %v1170_v25, 1  ;;  %v784_v12 = vadd.f32 %v783_v8, %v782_v13  ;;  %v1165_v16 = vadd.f32 %v1164_v22, %v3006_v35 }
 0x332   :  { %v807_v31 = vsel %vm806_vm5, %v770_v42, %v805_v28  ;;  %v1177_v39 = vadd.f32 %v1176_v21, %v2997_v63  ;;  %v2081_v47 = vpop.eup %2080  ;;  %v791_v36 = vadd.f32 %v790_v32, %v789_v17  ;;  %v1183_v33 = vrot.slane %v1182_v41, 2 }
 0x333   :  { %v809_v59 = vsel %vm808_vm6, %v777_v14, %v807_v31  ;;  %v1172_v60 = vadd.f32 %v1171_v52, %v1170_v25  ;;  %v1187_v15 = vsel %vm189_vm1, %v3009_v62, 0.0  ;;  %2082 = vrcp.f32 %v1158_v50 }
 0x334   :  { %v811_v29 = vsel %vm810_vm7, %v784_v12, %v809_v59  ;;  %v1178_v61 = vrot.slane %v1177_v39, 1  ;;  %v1184_v49 = vadd.f32 %v1183_v33, %v1182_v41  ;;  %v1188_v48 = vrot.slane %v1187_v15, 4 }
 0x335   :  { %v813_v3 = vsel %vm812_vm8, %v791_v36, %v811_v29  ;;  %2084 = vrcp.f32 %v1165_v16  ;;  %v1202_v35 = vmul.f32 %v2079_v27, %v2949_v26  ;;  %v1203_v51 = vmul.f32 %v2081_v47, %v2952_v53  ;;  %v3049_v26 = vpop.f32.mrf.mxu2 }
 0x336   :  { %814 = vrot.lane.b32.xlu2 %v813_v3, %s2336_s0  ;;  %v1179_v63 = vadd.f32 %v1178_v61, %v1177_v39  ;;  %v1185_v20 = vrot.slane %v1184_v49, 1  ;;  %v1189_v30 = vadd.f32 %v1188_v48, %v1187_v15  ;;  %2086 = vrcp.f32 %v1172_v60 }
 0x337   :  { %v1213_v0 = vmul.f32 %v3043_v43, %v1202_v35  ;;  %v1214_v1 = vmul.f32 %v3043_v43, %v1203_v51 }
 0x338   :  { %2088 = vrcp.f32 %v1179_v63  ;;  %v1186_v56 = vadd.f32 %v1185_v20, %v1184_v49  ;;  %v1190_v24 = vrot.slane %v1189_v30, 2 }
 0x339   :  { %v2083_v23 = vpop.eup %2082  ;;  %v1221_v11 = vsel %vm189_vm1, %v1213_v0, 0.0  ;;  %v1228_v40 = vsel %vm189_vm1, %v1214_v1, 0.0 }
 0x33a   :  { %v1191_v53 = vadd.f32 %v1190_v24, %v1189_v30  ;;  %2090 = vrcp.f32 %v1186_v56  ;;  %v1204_v34 = vmul.f32 %v2083_v23, %v2958_v45  ;;  %v1222_v58 = vrot.slane %v1221_v11, 4 }
 0x33b   :  { %v2085_v5 = vpop.eup %2084  ;;  %v1229_v57 = vrot.slane %v1228_v40, 4 }
 0x33c   :  { %v2087_v55 = vpop.eup %2086  ;;  %v1192_v13 = vrot.slane %v1191_v53, 1  ;;  %v1205_v17 = vmul.f32 %v2085_v5, %v2964_v7  ;;  %v1215_v18 = vmul.f32 %v3043_v43, %v1204_v34  ;;  %v1223_v19 = vadd.f32 %v1222_v58, %v1221_v11 }
 0x33d   :  { %v1206_v22 = vmul.f32 %v2087_v55, %v2968_v44  ;;  %v1230_v25 = vadd.f32 %v1229_v57, %v1228_v40  ;;  %v3065_v33 = vpop.f32.mrf.mxu2 }
 0x33e   :  { %v2089_v50 = vpop.eup %2088  ;;  %v1193_v42 = vadd.f32 %v1192_v13, %v1191_v53  ;;  %v1216_v32 = vmul.f32 %v3043_v43, %v1205_v17  ;;  %v1224_v21 = vrot.slane %v1223_v19, 2  ;;  %v1235_v28 = vsel %vm189_vm1, %v1215_v18, 0.0 }
 0x33f   :  { %v1207_v8 = vmul.f32 %v2089_v50, %v2974_v10  ;;  %v1217_v45 = vmul.f32 %v3043_v43, %v1206_v22  ;;  %v1231_v27 = vrot.slane %v1230_v25, 2  ;;  %v1236_v31 = vrot.slane %v1235_v28, 4 }
 0x340   :  { %v2091_v14 = vpop.eup %2090  ;;  %2092 = vrcp.f32 %v1193_v42  ;;  %v1242_v52 = vsel %vm189_vm1, %v1216_v32, 0.0  ;;  %v1225_v41 = vadd.f32 %v1224_v21, %v1223_v19 }
 0x341   :  { %v1218_v7 = vmul.f32 %v3043_v43, %v1207_v8  ;;  %v1208_v44 = vmul.f32 %v2091_v14, %v2985_v6  ;;  %v1232_v12 = vadd.f32 %v1231_v27, %v1230_v25  ;;  %v1243_v10 = vrot.slane %v1242_v52, 4 }
 0x342   :  { %v1249_v16 = vsel %vm189_vm1, %v1217_v45, 0.0  ;;  %v1226_v36 = vrot.slane %v1225_v41, 1  ;;  %v1237_v60 = vadd.f32 %v1236_v31, %v1235_v28 }
 0x343   :  { %v1256_v39 = vsel %vm189_vm1, %v1218_v7, 0.0  ;;  %v1219_v47 = vmul.f32 %v3043_v43, %v1208_v44  ;;  %v1233_v59 = vrot.slane %v1232_v12, 1  ;;  %v1244_v29 = vadd.f32 %v1243_v10, %v1242_v52 }
 0x344   :  { %v1250_v61 = vrot.slane %v1249_v16, 4  ;;  %v1257_v15 = vrot.slane %v1256_v39, 4  ;;  %v1227_v3 = vadd.f32 %v1226_v36, %v1225_v41  ;;  %v1238_v49 = vrot.slane %v1237_v60, 2 }
 0x345   :  { %v1234_v6 = vadd.f32 %v1233_v59, %v1232_v12  ;;  %v1263_v48 = vsel %vm189_vm1, %v1219_v47, 0.0  ;;  %v1245_v35 = vrot.slane %v1244_v29, 2  ;;  %v3072_v18 = vpop.f32.mrf.mxu2 }
 0x346   :  { %v2093_v63 = vpop.eup %2092  ;;  %v1251_v51 = vadd.f32 %v1250_v61, %v1249_v16  ;;  %v1258_v20 = vadd.f32 %v1257_v15, %v1256_v39  ;;  %v1264_v30 = vrot.slane %v1263_v48, 4  ;;  %v1239_v1 = vadd.f32 %v1238_v49, %v1237_v60  ;;  %v1495_v39 = vpop.permute.xlu2 %1494 }
 0x347   :  { %v1209_v0 = vmul.f32 %v2093_v63, %v3009_v62  ;;  %v1246_v56 = vadd.f32 %v1245_v35, %v1244_v29  ;;  %v1285_v34 = vsel %vm800_vm2, %v1234_v6, %v1227_v3  ;;  %v1500_v15 = vpop.permute.xlu1 %1499  ;;  %v1490_v49 = vpop.permute.xlu0 %1489 }
 0x348   :  { %v1252_v24 = vrot.slane %v1251_v51, 2  ;;  %v1259_v23 = vrot.slane %v1258_v20, 2  ;;  %v1265_v11 = vadd.f32 %v1264_v30, %v1263_v48  ;;  %v1240_v53 = vrot.slane %v1239_v1, 1  ;;  %v3087_v30 = vld [vmem:[#allocation11] ss:$0 sm:$0xff] }
 0x349   :  { %v1220_v40 = vmul.f32 %v3043_v43, %v1209_v0  ;;  %v1247_v58 = vrot.slane %v1246_v56, 1 }
 0x34a   :  { %v1253_v5 = vadd.f32 %v1252_v24, %v1251_v51  ;;  %v1260_v57 = vadd.f32 %v1259_v23, %v1258_v20  ;;  %v1266_v55 = vrot.slane %v1265_v11, 2  ;;  %v1241_v13 = vadd.f32 %v1240_v53, %v1239_v1 }
 0x34b   :  { %v1270_v17 = vsel %vm189_vm1, %v1220_v40, 0.0  ;;  %v1248_v62 = vadd.f32 %v1247_v58, %v1246_v56 }
 0x34c   :  { %v1254_v19 = vrot.slane %v1253_v5, 1  ;;  %v1267_v50 = vadd.f32 %v1266_v55, %v1265_v11  ;;  %v1261_v22 = vrot.slane %v1260_v57, 1  ;;  %v1271_v25 = vrot.slane %v1270_v17, 4 }
 0x34d   :  { %v1286_v42 = vsel %vm802_vm3, %v1241_v13, %v1285_v34  ;;  %v1398_v52 = vpop.f32.mrf.mxu2 }
 0x34e   :  { %v1255_v43 = vadd.f32 %v1254_v19, %v1253_v5  ;;  %v1287_v8 = vsel %vm804_vm4, %v1248_v62, %v1286_v42  ;;  %v1272_v32 = vadd.f32 %v1271_v25, %v1270_v17  ;;  %v1268_v45 = vrot.slane %v1267_v50, 1  ;;  %v1480_v36 = vpop.permute.xlu2 %1479 }
 0x34f   :  { %v1262_v27 = vadd.f32 %v1261_v22, %v1260_v57  ;;  %v1485_v48 = vpop.permute.xlu1 %1484  ;;  %v1475_v20 = vpop.permute.xlu0 %1474  ;;  %v1399_v17 = vadd.f32 %v3087_v30, %v1398_v52  ;;  %v1396_v22 = vadd.f32 %v3087_v30, %v3072_v18  ;;  %v1390_v18 = vadd.f32 %v3087_v30, %v3049_v26 }
 0x350   :  { %v1288_v21 = vsel %vm806_vm5, %v1255_v43, %v1287_v8  ;;  %v1273_v14 = vrot.slane %v1272_v32, 2  ;;  %v1269_v44 = vadd.f32 %v1268_v45, %v1267_v50  ;;  %v1393_v43 = vadd.f32 %v3087_v30, %v3065_v33 }
 0x351   :  { %v1289_v28 = vsel %vm808_vm6, %v1262_v27, %v1288_v21  ;;  %v1387_v33 = vadd.f32 %v3087_v30, %v3028_v9  ;;  %v1384_v26 = vadd.f32 %v3087_v30, %v3017_v46  ;;  %v1381_v9 = vadd.f32 %v3087_v30, %v2991_v38 }
 0x352   :  { %v1274_v7 = vadd.f32 %v1273_v14, %v1272_v32  ;;  %v1290_v12 = vsel %vm810_vm7, %v1269_v44, %v1289_v28  ;;  %v1378_v46 = vadd.f32 %v3087_v30, %v2954_v2  ;;  %v1375_v52 = vadd.f32 %v3087_v30, %v2938_v37 }
 0x353   :  { %v1518_v37 = vlaneseq }
 0x354   :  { %v1275_v41 = vrot.slane %v1274_v7, 1 }
 0x355   :  { %v1401_v16 = vpop.f32.mrf.mxu2 }
 0x356   :  { %v1276_v31 = vadd.f32 %v1275_v41, %v1274_v7  ;;  %v1465_v60 = vpop.permute.xlu2 %1464  ;;  %v1402_v62 = vadd.f32 %v3087_v30, %v1401_v16  ;;  %v1519_v41 = vshrl.u32 %v1518_v37, 7  ;;  %v2340_v16 = vmov 1.0  }
 0x357   :  { %v1470_v0 = vpop.permute.xlu1 %1469  ;;  %v1460_v58 = vpop.permute.xlu0 %1459  ;;  %v3131_v25 = vmul.f32 %v1465_v60, %v1399_v17 }
 0x358   :  { %v1291_v10 = vsel %vm812_vm8, %v1276_v31, %v1290_v12  ;;  %v3124_v50 = vmul.f32 %v1470_v0, %v1402_v62  ;;  %v3138_v8 = vmul.f32 %v1460_v58, %v1396_v22  ;;  %v3197_v12 = vand.u32 127, %v1518_v37  ;;  %v1850_v58 = vld [vmem:[#allocation13] sm:$0xff] }
 0x359   :  { %1292 = vrot.lane.b32.xlu0 %v1291_v10, %s2336_s0  ;;  %v3201_v31 = vmul.u32 8, %v1519_v41 }
 0x35b   :  { %vm1525_vm9 = vcmp.eq.s32.totalorder %v3197_v12, %v3201_v31  ;;  %v1556_v10 = vadd.s32 1, %v3201_v31  ;;  %v1808_v0 = vadd.s32 7, %v3201_v31 }
 0x35d   :  { %v1404_v47 = vpop.f32.mrf.mxu2  ;;  %vm1558_vm10 = vcmp.eq.s32.totalorder %v3197_v12, %v1556_v10  ;;  %vm1810_vm8 = vcmp.eq.s32.totalorder %v3197_v12, %v1808_v0 }
 0x35e   :  { %v3081_v61 = vpop.permute.xlu2 %1449  ;;  %v1405_v5 = vadd.f32 %v3087_v30, %v1404_v47 }
 0x35f   :  { %v1455_v55 = vpop.permute.xlu1 %1454  ;;  %v1445_v42 = vpop.permute.xlu0 %1444  ;;  %v3153_v21 = vmul.f32 %v3081_v61, %v1390_v18  ;;  %v2094_v61 = vld [vmem:[%s3417_s2 + $0x8] sm:$0xff] }
 0x360   :  { %v3119_v19 = vmul.f32 %v1475_v20, %v1405_v5  ;;  %v3145_v45 = vmul.f32 %v1455_v55, %v1393_v43  ;;  %v3160_v27 = vmul.f32 %v1445_v42, %v1387_v33  ;;  %v1766_v20 = vadd.s32 6, %v3201_v31 }
 0x362   :  { %vm1768_vm6 = vcmp.eq.s32.totalorder %v3197_v12, %v1766_v20 }
 0x365   :  { %v1407_v59 = vpop.f32.mrf.mxu2 }
 0x366   :  { %v3083_v6 = vpop.permute.xlu2 %1434 }
 0x367   :  { %v1440_v32 = vpop.permute.xlu1 %1439  ;;  %v1430_v7 = vpop.permute.xlu0 %1429  ;;  %v3175_v28 = vmul.f32 %v3083_v6, %v1381_v9  ;;  %v1724_v6 = vadd.s32 5, %v3201_v31 }
 0x368   :  { %v3167_v14 = vmul.f32 %v1440_v32, %v1384_v26  ;;  %v3182_v44 = vmul.f32 %v1430_v7, %v1378_v46 }
 0x369   :  { %vm1726_vm3 = vcmp.eq.s32.totalorder %v3197_v12, %v1724_v6 }
 0x36d   :  { %v1410_v29 = vpop.f32.mrf.mxu2 }
 0x36e   :  { %v1411_v40 = vadd.f32 %v3087_v30, %v1410_v29  ;;  %v1640_v29 = vadd.s32 3, %v3201_v31 }
 0x36f   :  { %v1425_v38 = vpop.permute.xlu1 %1424 }
 0x370   :  { %v3107_v57 = vmul.f32 %v1485_v48, %v1411_v40  ;;  %v3187_v2 = vmul.f32 %v1425_v38, %v1375_v52  ;;  %vm1642_vm14 = vcmp.eq.s32.totalorder %v3197_v12, %v1640_v29  ;;  %v1853_v40 = vld [vmem:[#allocation13 + $0x18] sm:$0xff] }
 0x375   :  { %v1413_v3 = vpop.f32.mrf.mxu2 }
 0x376   :  { %v1414_v23 = vadd.f32 %v3087_v30, %v1413_v3 }
 0x378   :  { %v3101_v34 = vmul.f32 %v1490_v49, %v1414_v23  ;;  %v1682_v49 = vadd.s32 4, %v3201_v31  ;;  %v2096_v23 = vld [vmem:[%s3418_s3 + $0x1] ss:$0 sm:$0xff] }
 0x37a   :  { %vm1684_vm4 = vcmp.eq.s32.totalorder %v3197_v12, %v1682_v49 }
 0x37d   :  { %v1416_v63 = vpop.f32.mrf.mxu2 }
 0x37e   :  { %v1417_v56 = vadd.f32 %v3087_v30, %v1416_v63  ;;  %v2095_v63 = vld [vmem:[%s3418_s3] ss:$0 sm:$0xff] }
 0x380   :  { %v3095_v53 = vmul.f32 %v1495_v39, %v1417_v56  ;;  %v1520_v39 = vadd.s32 8, %v1519_v41 }
 0x382   :  { %v3218_v47 = vmul.u32 8, %v1520_v39 }
 0x384   :  { %vm1526_vm11 = vcmp.eq.s32.totalorder %v3197_v12, %v3218_v47  ;;  %v1599_v3 = vadd.s32 2, %v3218_v47  ;;  %v1809_v56 = vadd.s32 7, %v3218_v47 }
 0x386   :  { %vm1601_vm2 = vcmp.eq.s32.totalorder %v3197_v12, %v1599_v3 }
 0x390   :  { %v815_v35 = vpop.permute.xlu2 %814 }
 0x391   :  { %v817_v51 = vmul.f32 %v815_v35, %v2600_v4  ;;  %v1408_v4 = vadd.f32 %v3087_v30, %v1407_v59  ;;  %v1557_v59 = vadd.s32 1, %v3218_v47 }
 0x393   :  { %819 = vrot.lane.b32.xlu1 %v817_v51, %s2336_s0  ;;  %v3112_v13 = vmul.f32 %v1480_v36, %v1408_v4  ;;  %vm1559_vm12 = vcmp.eq.s32.totalorder %v3197_v12, %v1557_v59  ;;  %v1683_v51 = vadd.s32 4, %v3218_v47  ;;  %v2097_v4 = vld [vmem:[%s3417_s2] sm:$0xff]  ;;  %s2342_s2 = smov 48  }
 0x395   :  { %vm1685_vm5 = vcmp.eq.s32.totalorder %v3197_v12, %v1683_v51 }
 0x398   :  { %v1419_v1 = vpop.f32.mrf.mxu2 }
 0x399   :  { %v1420_v24 = vadd.f32 %v3087_v30, %v1419_v1  ;;  %v1725_v30 = vadd.s32 5, %v3218_v47  ;;  %v1767_v1 = vadd.s32 6, %v3218_v47 }
 0x39b   :  { %v3092_v11 = vmul.f32 %v1500_v15, %v1420_v24  ;;  %v1641_v15 = vadd.s32 3, %v3218_v47  ;;  %vm1727_vm7 = vcmp.eq.s32.totalorder %v3197_v12, %v1725_v30 }
 0x39d   :  { %1531 = vmatpush.msra.mxu3 %v3092_v11  ;;  %1564 = vmatpush.msrb.mxu0 %v3092_v11  ;;  %vm1643_vm15 = vcmp.eq.s32.totalorder %v3197_v12, %v1641_v15 }
 0x39e   :  { %1816 = vmatpush.msrb.mxu1 %v3092_v11 }
 0x39f   :  { %1532 = vmatpush.msra.mxu3 %v3095_v53  ;;  %1565 = vmatpush.msrb.mxu0 %v3095_v53 }
 0x3a0   :  { %1817 = vmatpush.msrb.mxu1 %v3095_v53 }
 0x3a1   :  { %1533 = vmatpush.msra.mxu3 %v3101_v34  ;;  %1566 = vmatpush.msrb.mxu0 %v3101_v34 }
 0x3a2   :  { %1818 = vmatpush.msrb.mxu1 %v3101_v34 }
 0x3a3   :  { %1534 = vmatpush.msra.mxu3 %v3107_v57  ;;  %1567 = vmatpush.msrb.mxu0 %v3107_v57 }
 0x3a4   :  { %1819 = vmatpush.msrb.mxu1 %v3107_v57 }
 0x3a5   :  { %1535 = vmatpush.msra.mxu3 %v3112_v13  ;;  %1568 = vmatpush.msrb.mxu0 %v3112_v13 }
 0x3a6   :  { %1820 = vmatpush.msrb.mxu1 %v3112_v13 }
 0x3a7   :  { %1536 = vmatpush.msra.mxu3 %v3119_v19  ;;  %1569 = vmatpush.msrb.mxu0 %v3119_v19 }
 0x3a8   :  { %1821 = vmatpush.msrb.mxu1 %v3119_v19 }
 0x3a9   :  { %1537 = vmatpush.msra.mxu3 %v3124_v50  ;;  %1570 = vmatpush.msrb.mxu0 %v3124_v50 }
 0x3aa   :  { %1822 = vmatpush.msrb.mxu1 %v3124_v50 }
 0x3ab   :  { %1538 = vmatpush.msra.mxu3 %v3131_v25  ;;  %1571 = vmatpush.msrb.mxu0 %v3131_v25 }
 0x3ac   :  { %1823 = vmatpush.msrb.mxu1 %v3131_v25 }
 0x3ad   :  { %1539 = vmatpush.msra.mxu3 %v3138_v8  ;;  %1572 = vmatpush.msrb.mxu0 %v3138_v8 }
 0x3ae   :  { %1824 = vmatpush.msrb.mxu1 %v3138_v8 }
 0x3af   :  { %1540 = vmatpush.msra.mxu3 %v3145_v45  ;;  %1573 = vmatpush.msrb.mxu0 %v3145_v45 }
 0x3b0   :  { %1825 = vmatpush.msrb.mxu1 %v3145_v45 }
 0x3b1   :  { %1541 = vmatpush.msra.mxu3 %v3153_v21  ;;  %1574 = vmatpush.msrb.mxu0 %v3153_v21 }
 0x3b2   :  { %1826 = vmatpush.msrb.mxu1 %v3153_v21 }
 0x3b3   :  { %1542 = vmatpush.msra.mxu3 %v3160_v27  ;;  %1575 = vmatpush.msrb.mxu0 %v3160_v27 }
 0x3b4   :  { %1827 = vmatpush.msrb.mxu1 %v3160_v27 }
 0x3b5   :  { %1543 = vmatpush.msra.mxu3 %v3167_v14  ;;  %1576 = vmatpush.msrb.mxu0 %v3167_v14 }
 0x3b6   :  { %1828 = vmatpush.msrb.mxu1 %v3167_v14 }
 0x3b7   :  { %1544 = vmatpush.msra.mxu3 %v3175_v28  ;;  %1577 = vmatpush.msrb.mxu0 %v3175_v28 }
 0x3b8   :  { %1829 = vmatpush.msrb.mxu1 %v3175_v28 }
 0x3b9   :  { %1545 = vmatpush.msra.mxu3 %v3182_v44  ;;  %1578 = vmatpush.msrb.mxu0 %v3182_v44 }
 0x3ba   :  { %1830 = vmatpush.msrb.mxu1 %v3182_v44 }
 0x3bb   :  { %1546 = vmatpush.msra.mxu3 %v3187_v2  ;;  %1579 = vmatpush.msrb.mxu0 %v3187_v2 }
 0x3bc   :  { %1831 = vmatpush.msrb.mxu1 %v3187_v2  ;;  %1969 = vmatmul.msk.f32.vlgmr.msra.gmra.mxu3 %vm1525_vm9, %v2340_v16  ;;  %vm1769_vm9 = vcmp.eq.s32.totalorder %v3197_v12, %v1767_v1 }
 0x3bd   :  { %1606 = vmatpush.msrb.mxu3 %v3092_v11  ;;  %1648 = vmatpush.msra.mxu0 %v3092_v11 }
 0x3be   :  { %1973 = vmatmul.msk.f32.vlgmr.msrb.gmra.mxu0 %vm1558_vm10, %v2340_v16  ;;  %1997 = vmatmul.msk.f32.vlgmr.msrb.gmra.mxu1 %vm1810_vm8, %v2340_v16  ;;  %vm1811_vm10 = vcmp.eq.s32.totalorder %v3197_v12, %v1809_v56 }
 0x3bf   :  { %1607 = vmatpush.msrb.mxu3 %v3095_v53  ;;  %1649 = vmatpush.msra.mxu0 %v3095_v53 }
 0x3c1   :  { %1608 = vmatpush.msrb.mxu3 %v3101_v34  ;;  %1650 = vmatpush.msra.mxu0 %v3101_v34 }
 0x3c3   :  { %1609 = vmatpush.msrb.mxu3 %v3107_v57  ;;  %1651 = vmatpush.msra.mxu0 %v3107_v57 }
 0x3c4   :  { %1970 = vmatmul.msk.f32.gmra.mxu3 %vm1526_vm11, %v2340_v16  ;;  %vm1637_vm11 = vcmask 392448  }
 0x3c5   :  { %1610 = vmatpush.msrb.mxu3 %v3112_v13  ;;  %1652 = vmatpush.msra.mxu0 %v3112_v13 }
 0x3c6   :  { %1974 = vmatmul.msk.f32.gmra.mxu0 %vm1559_vm12, %v2340_v16  ;;  %1998 = vmatmul.msk.f32.gmra.mxu1 %vm1811_vm10, %v2340_v16  ;;  %vm1679_vm12 = vcmask 523648  }
 0x3c7   :  { %1611 = vmatpush.msrb.mxu3 %v3119_v19  ;;  %1653 = vmatpush.msra.mxu0 %v3119_v19 }
 0x3c9   :  { %1612 = vmatpush.msrb.mxu3 %v3124_v50  ;;  %1654 = vmatpush.msra.mxu0 %v3124_v50 }
 0x3cb   :  { %1613 = vmatpush.msrb.mxu3 %v3131_v25  ;;  %1655 = vmatpush.msra.mxu0 %v3131_v25  ;;  %v1293_v36 = vpop.permute.xlu0 %1292 }
 0x3cc   :  { %v1295_v60 = vmul.f32 %v1293_v36, %v2688_v54  ;;  %v1598_v54 = vadd.s32 2, %v3201_v31 }
 0x3cd   :  { %1614 = vmatpush.msrb.mxu3 %v3138_v8  ;;  %1656 = vmatpush.msra.mxu0 %v3138_v8 }
 0x3ce   :  { %1297 = vrot.lane.b32.xlu2 %v1295_v60, %s2336_s0  ;;  %vm1600_vm13 = vcmp.eq.s32.totalorder %v3197_v12, %v1598_v54 }
 0x3cf   :  { %1615 = vmatpush.msrb.mxu3 %v3145_v45  ;;  %1657 = vmatpush.msra.mxu0 %v3145_v45 }
 0x3d1   :  { %1616 = vmatpush.msrb.mxu3 %v3153_v21  ;;  %1658 = vmatpush.msra.mxu0 %v3153_v21 }
 0x3d3   :  { %1617 = vmatpush.msrb.mxu3 %v3160_v27  ;;  %1659 = vmatpush.msra.mxu0 %v3160_v27 }
 0x3d5   :  { %1618 = vmatpush.msrb.mxu3 %v3167_v14  ;;  %1660 = vmatpush.msra.mxu0 %v3167_v14 }
 0x3d6   :  { %1896 = vperm.xlu2 %2021, %v2094_v61  }
 0x3d7   :  { %1619 = vmatpush.msrb.mxu3 %v3175_v28  ;;  %1661 = vmatpush.msra.mxu0 %v3175_v28 }
 0x3d9   :  { %1620 = vmatpush.msrb.mxu3 %v3182_v44  ;;  %1662 = vmatpush.msra.mxu0 %v3182_v44 }
 0x3db   :  { %1621 = vmatpush.msrb.mxu3 %v3187_v2  ;;  %1663 = vmatpush.msra.mxu0 %v3187_v2 }
 0x3dc   :  { %1977 = vmatmul.msk.f32.vlgmr.msrb.gmra.mxu3 %vm1600_vm13, %v2340_v16  ;;  %1981 = vmatmul.msk.f32.vlgmr.msra.gmra.mxu0 %vm1642_vm14, %v2340_v16  ;;  %vm1721_vm13 = vcmask 654848   ;;  %vm1763_vm14 = vcmask 786048  }
 0x3dd   :  { %1690 = vmatpush.msra.mxu3 %v3092_v11  ;;  %1732 = vmatpush.msrb.mxu0 %v3092_v11 }
 0x3df   :  { %1691 = vmatpush.msra.mxu3 %v3095_v53  ;;  %1733 = vmatpush.msrb.mxu0 %v3095_v53 }
 0x3e1   :  { %1692 = vmatpush.msra.mxu3 %v3101_v34  ;;  %1734 = vmatpush.msrb.mxu0 %v3101_v34 }
 0x3e3   :  { %1693 = vmatpush.msra.mxu3 %v3107_v57  ;;  %1735 = vmatpush.msrb.mxu0 %v3107_v57 }
 0x3e4   :  { %1982 = vmatmul.msk.f32.gmra.mxu0 %vm1643_vm15, %v2340_v16  ;;  %1978 = vmatmul.msk.f32.gmra.mxu3 %vm1601_vm2, %v2340_v16  ;;  %vm1805_vm15 = vcmask 917248   ;;  %vm1847_vm2 = vcmask 1048448  }
 0x3e5   :  { %1694 = vmatpush.msra.mxu3 %v3112_v13  ;;  %1736 = vmatpush.msrb.mxu0 %v3112_v13 }
 0x3e7   :  { %1695 = vmatpush.msra.mxu3 %v3119_v19  ;;  %1737 = vmatpush.msrb.mxu0 %v3119_v19 }
 0x3e9   :  { %1696 = vmatpush.msra.mxu3 %v3124_v50  ;;  %1738 = vmatpush.msrb.mxu0 %v3124_v50 }
 0x3eb   :  { %1697 = vmatpush.msra.mxu3 %v3131_v25  ;;  %1739 = vmatpush.msrb.mxu0 %v3131_v25 }
 0x3ed   :  { %1698 = vmatpush.msra.mxu3 %v3138_v8  ;;  %1740 = vmatpush.msrb.mxu0 %v3138_v8 }
 0x3ef   :  { %1699 = vmatpush.msra.mxu3 %v3145_v45  ;;  %1741 = vmatpush.msrb.mxu0 %v3145_v45 }
 0x3f1   :  { %1700 = vmatpush.msra.mxu3 %v3153_v21  ;;  %1742 = vmatpush.msrb.mxu0 %v3153_v21 }
 0x3f3   :  { %1701 = vmatpush.msra.mxu3 %v3160_v27  ;;  %1743 = vmatpush.msrb.mxu0 %v3160_v27 }
 0x3f5   :  { %1702 = vmatpush.msra.mxu3 %v3167_v14  ;;  %1744 = vmatpush.msrb.mxu0 %v3167_v14 }
 0x3f7   :  { %1703 = vmatpush.msra.mxu3 %v3175_v28  ;;  %1745 = vmatpush.msrb.mxu0 %v3175_v28 }
 0x3f9   :  { %1704 = vmatpush.msra.mxu3 %v3182_v44  ;;  %1746 = vmatpush.msrb.mxu0 %v3182_v44 }
 0x3fb   :  { %1705 = vmatpush.msra.mxu3 %v3187_v2  ;;  %1747 = vmatpush.msrb.mxu0 %v3187_v2 }
 0x3fc   :  { %1989 = vmatmul.msk.f32.vlgmr.msrb.gmra.mxu0 %vm1726_vm3, %v2340_v16  ;;  %1985 = vmatmul.msk.f32.vlgmr.msra.gmra.mxu3 %vm1684_vm4, %v2340_v16 }
 0x3fd   :  { %1774 = vmatpush.msrb.mxu3 %v3092_v11  ;;  %1880 = vmatpush.msra.mxu0 %v1853_v40 }
 0x3ff   :  { %1775 = vmatpush.msrb.mxu3 %v3095_v53  ;;  %v1852_v53 = vld [vmem:[#allocation13 + $0x10] sm:$0xff] }
 0x400   :  { %1881 = vmatpush.msra.mxu0 %v1852_v53 }
 0x401   :  { %1776 = vmatpush.msrb.mxu3 %v3101_v34  ;;  %v1851_v34 = vld [vmem:[#allocation13 + $0x8] sm:$0xff] }
 0x402   :  { %1882 = vmatpush.msra.mxu0 %v1851_v34 }
 0x403   :  { %1777 = vmatpush.msrb.mxu3 %v3107_v57 }
 0x404   :  { %1986 = vmatmul.msk.f32.gmra.mxu3 %vm1685_vm5, %v2340_v16  ;;  %1990 = vmatmul.msk.f32.gmra.mxu0 %vm1727_vm7, %v2340_v16 }
 0x405   :  { %1778 = vmatpush.msrb.mxu3 %v3112_v13  ;;  %v820_v48 = vpop.permute.xlu1 %819  ;;  %1883 = vmatpush.msra.mxu0 %v1850_v58 }
 0x406   :  { %v822_v35 = vadd.f32 %v2095_v63, %v820_v48 }
 0x407   :  { %1779 = vmatpush.msrb.mxu3 %v3119_v19 }
 0x408   :  { %1860 = vrot.lane.b32.xlu0 %v822_v35, %s2339_s26 }
 0x409   :  { %1780 = vmatpush.msrb.mxu3 %v3124_v50 }
 0x40b   :  { %1781 = vmatpush.msrb.mxu3 %v3131_v25 }
 0x40d   :  { %1782 = vmatpush.msrb.mxu3 %v3138_v8 }
 0x40f   :  { %1783 = vmatpush.msrb.mxu3 %v3145_v45 }
 0x411   :  { %1784 = vmatpush.msrb.mxu3 %v3153_v21 }
 0x413   :  { %1785 = vmatpush.msrb.mxu3 %v3160_v27 }
 0x415   :  { %1786 = vmatpush.msrb.mxu3 %v3167_v14 }
 0x417   :  { %1787 = vmatpush.msrb.mxu3 %v3175_v28 }
 0x419   :  { %1788 = vmatpush.msrb.mxu3 %v3182_v44 }
 0x41b   :  { %1789 = vmatpush.msrb.mxu3 %v3187_v2  ;;  %v2029_v2 = vld [vmem:[#allocation14] ss:$0 sm:$0xff] }
 0x41c   :  { %1993 = vmatmul.msk.f32.vlgmr.msrb.gmra.mxu3 %vm1768_vm6, %v2340_v16 }
 0x424   :  { %1994 = vmatmul.msk.f32.gmra.mxu3 %vm1769_vm9, %v2340_v16 }
 0x428   :  { %v1298_v24 = vpop.permute.xlu2 %1297 }
 0x429   :  { %v1300_v11 = vadd.f32 %v2096_v23, %v1298_v24 }
 0x42b   :  { %1862 = vrot.lane.b32.xlu1 %v1300_v11, %s2339_s26 }
 0x430   :  { %v1897_v8 = vpop.permute.xlu2 %1896 }
 0x433   :  { %1892 = vperm.xlu1 %2023, %v2097_v4  }
 0x43b   :  { %v1581_v5 = vpop.f32.mrf.mxu0  ;;  %v1833_v18 = vpop.f32.mrf.mxu1 }
 0x43c   :  { %1589 = vrot.lane.b32.xlu2 %v1581_v5, %s2341_s19 }
 0x43f   :  { %v1548_v57 = vpop.f32.mrf.mxu3 }
 0x440   :  { %1554 = vst.msk [vmem:[%s3428_s13] sm:$0xff] %vm225_vm0, %v1548_v57 }
 0x443   :  { %v1584_v13 = vpop.f32.mrf.mxu0  ;;  %v1836_v26 = vpop.f32.mrf.mxu1 }
 0x444   :  { %1591 = vrot.lane.b32.xlu0 %v1584_v13, %s2341_s19 }
 0x447   :  { %v1551_v55 = vpop.f32.mrf.mxu3 }
 0x448   :  { %1555 = vst.msk [vmem:[%s3428_s13 + $0x8] sm:$0xff] %vm225_vm0, %v1551_v55  ;;  %vm1595_vm0 = vcmask 261248  }
 0x459   :  { %v1665_v17 = vpop.f32.mrf.mxu0 }
 0x45a   :  { %1673 = vrot.lane.b32.xlu0 %v1665_v17, %s2342_s2 }
 0x45f   :  { %v1623_v62 = vpop.f32.mrf.mxu3 }
 0x460   :  { %1631 = vrot.lane.b32.xlu1 %v1623_v62, %s2337_s29 }
 0x461   :  { %v1668_v19 = vpop.f32.mrf.mxu0 }
 0x467   :  { %v1626_v50 = vpop.f32.mrf.mxu3 }
 0x468   :  { %1675 = vrot.lane.b32.xlu1 %v1668_v19, %s2342_s2  ;;  %1633 = vrot.lane.b32.xlu2 %v1626_v50, %s2337_s29 }
 0x479   :  { %v1749_v22 = vpop.f32.mrf.mxu0 }
 0x47a   :  { %1757 = vrot.lane.b32.xlu0 %v1749_v22, %s2343_s5  ;;  %v1861_v25 = vpop.permute.xlu0 %1860 }
 0x47b   :  { %1999 = vmatmul.msk.f32.vlgmr.msra.gmra.mxu0 %vm189_vm1, %v1861_v25 }
 0x47f   :  { %v1707_v42 = vpop.f32.mrf.mxu3 }
 0x480   :  { %1715 = vrot.lane.b32.xlu2 %v1707_v42, %s2339_s26 }
 0x481   :  { %v1752_v32 = vpop.f32.mrf.mxu0 }
 0x482   :  { %1759 = vrot.lane.b32.xlu1 %v1752_v32, %s2343_s5 }
 0x487   :  { %v1710_v43 = vpop.f32.mrf.mxu3 }
 0x488   :  { %1717 = vrot.lane.b32.xlu0 %v1710_v43, %s2339_s26 }
 0x48a   :  { %1841 = vrot.lane.b32.xlu1 %v1833_v18, %s2344_s22 }
 0x496   :  { %v1590_v33 = vpop.permute.xlu2 %1589 }
 0x497   :  { %1596 = vst.msk [vmem:[%s3428_s13] sm:$0xff] %vm1595_vm0, %v1590_v33 }
 0x49d   :  { %v1863_v21 = vpop.permute.xlu1 %1862 }
 0x49e   :  { %2000 = vmatmul.msk.f32.gmra.mxu0 %vm189_vm1, %v1863_v21 }
 0x49f   :  { %v1791_v45 = vpop.f32.mrf.mxu3 }
 0x4a0   :  { %1799 = vrot.lane.b32.xlu2 %v1791_v45, %s2336_s0 }
 0x4a5   :  { %v1893_v7 = vpop.permute.xlu1 %1892 }
 0x4a7   :  { %v1794_v27 = vpop.f32.mrf.mxu3 }
 0x4a8   :  { %1801 = vrot.lane.b32.xlu0 %v1794_v27, %s2336_s0  ;;  %1843 = vrot.lane.b32.xlu2 %v1836_v26, %s2344_s22  ;;  %s2345_s22 = smov [#allocation16]  }
 0x4a9   :  { %s1907_s23 = sshll.u32 %s2345_s22, 4  ;;  %s1908_s23 = int_to_ptr.vmem [resolvable:$true] %s1907_s23 }
 0x4b6   :  { %v1592_v9 = vpop.permute.xlu0 %1591 }
 0x4b7   :  { %1597 = vst.msk [vmem:[%s3428_s13 + $0x8] sm:$0xff] %vm1595_vm0, %v1592_v9 }
 0x4c2   :  { %v1634_v14 = vpop.permute.xlu2 %1633 }
 0x4c3   :  { %1639 = vst.msk [vmem:[%s3428_s13 + $0x8] sm:$0xff] %vm1637_vm11, %v1634_v14 }
 0x4cc   :  { %v1674_v46 = vpop.permute.xlu0 %1673 }
 0x4d2   :  { %v1632_v28 = vpop.permute.xlu1 %1631 }
 0x4d3   :  { %1638 = vst.msk [vmem:[%s3428_s13] sm:$0xff] %vm1637_vm11, %v1632_v28 }
 0x4d4   :  { %1680 = vst.msk [vmem:[%s3428_s13] sm:$0xff] %vm1679_vm12, %v1674_v46 }
 0x4da   :  { %v1716_v38 = vpop.permute.xlu2 %1715  ;;  %v1676_v52 = vpop.permute.xlu1 %1675 }
 0x4db   :  { %1722 = vst.msk [vmem:[%s3428_s13] sm:$0xff] %vm1721_vm13, %v1716_v38 }
 0x4dc   :  { %1681 = vst.msk [vmem:[%s3428_s13 + $0x8] sm:$0xff] %vm1679_vm12, %v1676_v52 }
 0x4ec   :  { %v1758_v44 = vpop.permute.xlu0 %1757 }
 0x4ed   :  { %1764 = vst.msk [vmem:[%s3428_s13] sm:$0xff] %vm1763_vm14, %v1758_v44 }
 0x4f4   :  { %v1760_v16 = vpop.permute.xlu1 %1759 }
 0x4f8   :  { %v1885_v41 = vpop.f32.mrf.mxu0 }
 0x4f9   :  { %v1886_v12 = vadd.f32 %v2029_v2, %v1885_v41 }
 0x4fa   :  { %v1800_v37 = vpop.permute.xlu2 %1799  ;;  %v1718_v10 = vpop.permute.xlu0 %1717 }
 0x4fb   :  { %1806 = vst.msk [vmem:[%s3428_s13] sm:$0xff] %vm1805_vm15, %v1800_v37  ;;  %v1899_v31 = vmul.f32 %v1893_v7, %v1886_v12 }
 0x4fc   :  { %1723 = vst.msk [vmem:[%s3428_s13 + $0x8] sm:$0xff] %vm1721_vm13, %v1718_v10  ;;  %v1842_v39 = vpop.permute.xlu1 %1841 }
 0x4fd   :  { %1901 = vst.msk [vmem:[#allocation16] sm:$0xff] %vm189_vm1, %v1899_v31 }
 0x4fe   :  { %1765 = vst.msk [vmem:[%s3428_s13 + $0x8] sm:$0xff] %vm1763_vm14, %v1760_v16 }
 0x4ff   :  { %1848 = vst.msk [vmem:[%s3428_s13] sm:$0xff] %vm1847_vm2, %v1842_v39 }
 0x502   :  { %v1844_v47 = vpop.permute.xlu2 %1843 }
 0x51a   :  { %v1802_v36 = vpop.permute.xlu0 %1801 }
 0x51b   :  { %1807 = vst.msk [vmem:[%s3428_s13 + $0x8] sm:$0xff] %vm1805_vm15, %v1802_v36  ;;  %v1888_v59 = vpop.f32.mrf.mxu0 }
 0x51c   :  { %1849 = vst.msk [vmem:[%s3428_s13 + $0x8] sm:$0xff] %vm1847_vm2, %v1844_v47  ;;  %v1889_v60 = vadd.f32 %v2029_v2, %v1888_v59 }
 0x51e   :  { %v1900_v54 = vmul.f32 %v1897_v8, %v1889_v60 }
 0x520   :  { %1902 = vst.msk [vmem:[#allocation16 + $0x8] sm:$0xff] %vm189_vm1, %v1900_v54 }
 0x521   :  { %1915 = dma.vmem_to_hbm [thread:$0]  %s1908_s23, 256, %s1910_s7, [#allocation4], %s2327_s16, %s2327_s16, %s2328_s17  }
 0x522   :  { %2324 = dma.done.wait [#allocation4], 256  }
 0x523   :  { %2325 = vsyncadd [#allocation4], 4294967040 }
 0x524   :  { %1924 = vsyncpa [#allocation3], 1 }
 0x525   :  { %1925 = vsyncpa [#allocation6], 1 }
 0x526   :  { %1926 = vsyncpa [#allocation9], 1 }
 0x527   :  { %1927 = vsyncpa [#allocation12], 1 }
 0x528   :  { %1928 = vsyncpa [#allocation15], 1 }
 0x529   :  { %1929 = vsyncpa [#allocation4], 1 }

</bundles_post_ra>
